<compile_context>
chip_gen: v6e
topology: v6e:2x2x1
jax: 0.10.0
libtpu: 0.0.40
codegen_flags: <defaults>
</compile_context>

<pallas_src>
import math
from functools import partial

import jax
import jax.numpy as jnp
from jax import lax
from jax.experimental import pallas as pl
from jax.experimental.pallas import tpu as pltpu


# ----------------------------------------------------------------------------
# Fused kernel: in-proj -> per-head attention -> out-proj, single grid step.
# ----------------------------------------------------------------------------
def _fused_attention_kernel(x_ref, w_in_ref, b_in_ref, w_out_ref, b_out_ref,
                            o_ref, *, num_heads, scale, use_bf16):
    L, N, C = x_ref.shape
    H = num_heads
    D = C // H
    mxu_dtype = jnp.bfloat16 if use_bf16 else jnp.float32

    # Hoist weight loads/casts out of the batch/head loops (done once).
    w_in = w_in_ref[...].astype(mxu_dtype)     # (3C, C)  PyTorch (out, in) layout
    w_out = w_out_ref[...].astype(mxu_dtype)   # (C, C)   PyTorch (out, in) layout
    b_in = b_in_ref[...]                       # (1, 3C)  f32
    b_out = b_out_ref[...]                     # (1, C)   f32

    # Contract axis 1 of both operands (== A @ B.T without materializing B.T).
    contract_last = (((1,), (1,)), ((), ()))

    for n in range(N):                         # static unroll over batch
        xn = x_ref[:, n, :].astype(mxu_dtype)  # (L, C)

        # in-projection: qkv = xn @ w_in.T + b_in   (f32 accumulation)
        qkv = lax.dot_general(xn, w_in, contract_last,
                              preferred_element_type=jnp.float32) + b_in  # (L, 3C)

        acc = jnp.zeros((L, C), jnp.float32)
        for h in range(H):                     # static unroll over heads
            lo, hi = h * D, (h + 1) * D
            qh = qkv[:, 0 * C + lo:0 * C + hi].astype(mxu_dtype)   # (L, D)
            kh = qkv[:, 1 * C + lo:1 * C + hi].astype(mxu_dtype)   # (L, D)
            vh = qkv[:, 2 * C + lo:2 * C + hi].astype(mxu_dtype)   # (L, D)

            # scores: contract head dim of q and k directly (no k.T)
            s = lax.dot_general(qh, kh, contract_last,
                                preferred_element_type=jnp.float32) * scale  # (L, L)

            # softmax in f32; reciprocal on the (otherwise idle) EUP slot
            m = jnp.max(s, axis=-1, keepdims=True)
            e = jnp.exp(s - m)
            p = e * pl.reciprocal(jnp.sum(e, axis=-1, keepdims=True), approx=True)

            oh = jnp.dot(p.astype(mxu_dtype), vh,
                         preferred_element_type=jnp.float32)        # (L, D)

            # out-projection folded per head: acc += oh @ w_out[:, hD:(h+1)D].T
            acc = acc + lax.dot_general(oh.astype(mxu_dtype), w_out[:, lo:hi],
                                        contract_last,
                                        preferred_element_type=jnp.float32)

        # lane-dense (L, C) store of the finished batch slice
        o_ref[:, n, :] = (acc + b_out).astype(o_ref.dtype)


# ----------------------------------------------------------------------------
# Wrapper: parameters stay in PyTorch layout; no transposes / .T host-side.
# ----------------------------------------------------------------------------
def attention_forward(x, params, num_heads, *, use_bf16=True):
    """x: (L, N, C). Self-attention forward of the Attention module."""
    L, N, C = x.shape
    H = num_heads
    assert C % H == 0, "dim must be divisible by num_heads"
    D = C // H
    scale = D ** (-0.5)

    w_in = params["in_proj_weight"]                 # (3C, C)
    b_in = params["in_proj_bias"].reshape(1, 3 * C)  # free metadata reshape
    w_out = params["out_proj_weight"]               # (C, C)
    b_out = params["out_proj_bias"].reshape(1, C)

    flops = (2 * L * N * C * 3 * C            # in-projection
             + N * H * (2 * L * L * D) * 2    # q@k^T and p@v
             + 2 * L * N * C * C)             # out-projection
    transcendentals = N * H * L * L + N * H * L          # exp + reciprocal
    bytes_accessed = 4 * (2 * x.size + w_in.size + b_in.size
                          + w_out.size + b_out.size)

    kernel = partial(_fused_attention_kernel,
                     num_heads=H, scale=scale, use_bf16=use_bf16)

    return pl.pallas_call(
        kernel,
        out_shape=jax.ShapeDtypeStruct((L, N, C), x.dtype),
        grid=(1,),
        in_specs=[
            pl.BlockSpec((L, N, C), lambda i: (0, 0, 0)),
            pl.BlockSpec((3 * C, C), lambda i: (0, 0)),
            pl.BlockSpec((1, 3 * C), lambda i: (0, 0)),
            pl.BlockSpec((C, C), lambda i: (0, 0)),
            pl.BlockSpec((1, C), lambda i: (0, 0)),
        ],
        out_specs=pl.BlockSpec((L, N, C), lambda i: (0, 0, 0)),
        compiler_params=pltpu.CompilerParams(
            dimension_semantics=("parallel",),
            vmem_limit_bytes=32 * 1024 * 1024,
        ),
        cost_estimate=pl.CostEstimate(
            flops=flops,
            transcendentals=transcendentals,
            bytes_accessed=bytes_accessed,
        ),
    )(x, w_in, b_in, w_out, b_out)


# ----------------------------------------------------------------------------
# Pure-JAX references
# ----------------------------------------------------------------------------
def attention_reference_f32(x, params, num_heads):
    """Faithful f32 transcription of the PyTorch module forward."""
    L, N, C = x.shape
    H = num_heads
    D = C // H
    scale = D ** (-0.5)
    qkv = x @ params["in_proj_weight"].T + params["in_proj_bias"]
    q, k, v = jnp.split(qkv, 3, axis=-1)
    to_heads = lambda t: jnp.transpose(t.reshape(L, N * H, D), (1, 0, 2))
    qh, kh, vh = to_heads(q), to_heads(k), to_heads(v)
    s = jnp.einsum("bld,bmd->blm", qh * scale, kh)
    p = jax.nn.softmax(s, axis=-1)
    xh = jnp.einsum("blm,bmd->bld", p, vh)
    xo = jnp.transpose(xh, (1, 0, 2)).reshape(L, N, C)
    return xo @ params["out_proj_weight"].T + params["out_proj_bias"]


def attention_reference_mixed(x, params, num_heads, use_bf16=True):
    """Same mixed-precision recipe as the kernel (bf16 MXU inputs, f32 accum)."""
    mxu = jnp.bfloat16 if use_bf16 else jnp.float32
    L, N, C = x.shape
    H = num_heads
    D = C // H
    scale = D ** (-0.5)
    cl = (((1,), (1,)), ((), ()))
    w_in = params["in_proj_weight"].astype(mxu)
    w_out = params["out_proj_weight"].astype(mxu)
    qkv = lax.dot_general(x.reshape(L * N, C).astype(mxu), w_in, cl,
                          preferred_element_type=jnp.float32)
    qkv = qkv + params["in_proj_bias"]
    qkv = qkv.reshape(L, N, 3 * C)
    q, k, v = jnp.split(qkv, 3, axis=-1)
    to_heads = lambda t: jnp.transpose(t.reshape(L, N * H, D), (1, 0, 2)).astype(mxu)
    qh, kh, vh = to_heads(q), to_heads(k), to_heads(v)
    s = jnp.einsum("bld,bmd->blm", qh, kh,
                   preferred_element_type=jnp.float32) * scale
    p = jax.nn.softmax(s, axis=-1)
    xh = jnp.einsum("blm,bmd->bld", p.astype(mxu), vh,
                    preferred_element_type=jnp.float32)
    xo = jnp.transpose(xh, (1, 0, 2)).reshape(L * N, C)
    out = lax.dot_general(xo.astype(mxu), w_out, cl,
                          preferred_element_type=jnp.float32)
    return (out + params["out_proj_bias"]).reshape(L, N, C)


# ----------------------------------------------------------------------------
# main
# ----------------------------------------------------------------------------
if __name__ == "__main__":
    # Small shapes consistent with the module: seq L=8, batch N=2, dim C=128,
    # heads H=4 (head_dim 32).  C=128 keeps the fused output stores lane-dense.
    L, N, C, H = 8, 2, 128, 4
    D = C // H
    scale = D ** (-0.5)

    key = jax.random.PRNGKey(0)
    k_x, k_in, k_ib, k_ow, k_ob = jax.random.split(key, 5)

    x = jax.random.normal(k_x, (L, N, C), dtype=jnp.float32)

    # Parameter shapes mirror the module __init__ (values randomized to
    # exercise the bias paths too).
    params = {
        "in_proj_weight": jax.random.normal(k_in, (3 * C, C), jnp.float32) * scale,
        "in_proj_bias": jax.random.normal(k_ib, (3 * C,), jnp.float32) * 0.02,
        "out_proj_weight": jax.random.normal(k_ow, (C, C), jnp.float32)
        * (1.0 / math.sqrt(C)),
        "out_proj_bias": jax.random.normal(k_ob, (C,), jnp.float32) * 0.01,
    }

    # 1) full-f32 kernel vs faithful f32 reference (semantics check)
    out_f32 = jax.block_until_ready(
        attention_forward(x, params, num_heads=H, use_bf16=False))
    ref_f32 = attention_reference_f32(x, params, num_heads=H)
    assert out_f32.shape == (L, N, C) and out_f32.dtype == x.dtype
    assert jnp.allclose(out_f32, ref_f32, atol=2e-2, rtol=2e-2), \
        "f32 kernel mismatch vs f32 reference"

    # 2) mixed-precision (bf16-MXU) kernel: the performance path
    out = jax.block_until_ready(attention_forward(x, params, num_heads=H))
    ref_mixed = attention_reference_mixed(x, params, num_heads=H)
    assert out.shape == (L, N, C) and out.dtype == x.dtype
    assert jnp.allclose(out, ref_mixed, atol=2e-2, rtol=2e-2), \
        "bf16 kernel mismatch vs mixed-precision reference"
    rel_err = jnp.linalg.norm(out - ref_f32) / jnp.linalg.norm(ref_f32)
    assert float(rel_err) < 5e-2, f"bf16 kernel rel-L2 error too large: {rel_err}"

    print("KERNEL_OK")
</pallas_src>

<mosaic_0001>
module attributes {stable_mosaic.version = 11 : i64} {
  func.func @_fused_attention_kernel(%arg0: i32, %arg1: memref<8x2x128xf32, #tpu.memory_space<vmem>>, %arg2: memref<384x128xf32, #tpu.memory_space<vmem>>, %arg3: memref<1x384xf32, #tpu.memory_space<vmem>>, %arg4: memref<128x128xf32, #tpu.memory_space<vmem>>, %arg5: memref<1x128xf32, #tpu.memory_space<vmem>>, %arg6: memref<8x2x128xf32, #tpu.memory_space<vmem>>) attributes {dimension_semantics = [#tpu.dimension_semantics<parallel>], iteration_bounds = array<i64: 1>, scalar_prefetch = 0 : i64, scratch_operands = 0 : i64, tpu.core_type = #tpu.core_type<tc>, window_params = [{pipeline_mode = #tpu.pipeline_mode<synchronous>, transform_indices = @transform_0, window_bounds = array<i64: 8, 2, 128>}, {pipeline_mode = #tpu.pipeline_mode<synchronous>, transform_indices = @transform_1, window_bounds = array<i64: 384, 128>}, {pipeline_mode = #tpu.pipeline_mode<synchronous>, transform_indices = @transform_2, window_bounds = array<i64: 1, 384>}, {pipeline_mode = #tpu.pipeline_mode<synchronous>, transform_indices = @transform_3, window_bounds = array<i64: 128, 128>}, {pipeline_mode = #tpu.pipeline_mode<synchronous>, transform_indices = @transform_4, window_bounds = array<i64: 1, 128>}, {pipeline_mode = #tpu.pipeline_mode<synchronous>, transform_indices = @transform_5, window_bounds = array<i64: 8, 2, 128>}]} {
    %c0 = arith.constant 0 : index
    %c0_0 = arith.constant 0 : index
    %0 = vector.load %arg2[%c0, %c0_0] : memref<384x128xf32, #tpu.memory_space<vmem>>, vector<384x128xf32>
    %c0_1 = arith.constant 0 : index
    %c0_2 = arith.constant 0 : index
    %1 = vector.load %arg4[%c0_1, %c0_2] : memref<128x128xf32, #tpu.memory_space<vmem>>, vector<128x128xf32>
    %c0_3 = arith.constant 0 : index
    %c0_4 = arith.constant 0 : index
    %2 = vector.load %arg3[%c0_3, %c0_4] : memref<1x384xf32, #tpu.memory_space<vmem>>, vector<1x384xf32>
    %c0_5 = arith.constant 0 : index
    %c0_6 = arith.constant 0 : index
    %3 = vector.load %arg5[%c0_5, %c0_6] : memref<1x128xf32, #tpu.memory_space<vmem>>, vector<1x128xf32>
    %c0_7 = arith.constant 0 : index
    %c0_8 = arith.constant 0 : index
    %c0_9 = arith.constant 0 : index
    %4 = vector.load %arg1[%c0_7, %c0_8, %c0_9] : memref<8x2x128xf32, #tpu.memory_space<vmem>>, vector<8x1x128xf32>
    %5 = vector.shape_cast %4 : vector<8x1x128xf32> to vector<8x128xf32>
    %cst = arith.constant dense<0.000000e+00> : vector<8x384xf32>
    %6 = tpu.matmul %5, %0, %cst {dimension_numbers = #tpu.dot_dimension_numbers<[1], [1], [0], [0], [0, 0, 1, 0], [], []>} : vector<8x128xf32>, vector<384x128xf32>, vector<8x384xf32> -> vector<8x384xf32>
    %7 = vector.broadcast %2 : vector<1x384xf32> to vector<8x384xf32>
    %8 = arith.addf %6, %7 : vector<8x384xf32>
    %cst_10 = arith.constant 0.000000e+00 : f32
    %9 = vector.broadcast %cst_10 : f32 to vector<8x128xf32>
    %10 = vector.extract_strided_slice %8 {offsets = [0, 0], sizes = [8, 32], strides = [1, 1]} : vector<8x384xf32> to vector<8x32xf32>
    %11 = vector.extract_strided_slice %8 {offsets = [0, 128], sizes = [8, 32], strides = [1, 1]} : vector<8x384xf32> to vector<8x32xf32>
    %12 = vector.extract_strided_slice %8 {offsets = [0, 256], sizes = [8, 32], strides = [1, 1]} : vector<8x384xf32> to vector<8x32xf32>
    %cst_11 = arith.constant dense<0.000000e+00> : vector<8x8xf32>
    %13 = tpu.matmul %10, %11, %cst_11 {dimension_numbers = #tpu.dot_dimension_numbers<[1], [1], [0], [0], [0, 0, 1, 0], [], []>} : vector<8x32xf32>, vector<8x32xf32>, vector<8x8xf32> -> vector<8x8xf32>
    %cst_12 = arith.constant 0.176776692 : f32
    %14 = vector.broadcast %cst_12 : f32 to vector<8x8xf32>
    %15 = arith.mulf %13, %14 : vector<8x8xf32>
    %cst_13 = arith.constant dense<0xFF800000> : vector<8xf32>
    %16 = vector.multi_reduction <maximumf>, %15, %cst_13 [1] : vector<8x8xf32> to vector<8xf32>
    %17 = vector.shape_cast %16 : vector<8xf32> to vector<8x1xf32>
    %18 = vector.broadcast %17 : vector<8x1xf32> to vector<8x8xf32>
    %19 = arith.subf %15, %18 : vector<8x8xf32>
    %20 = math.exp %19 : vector<8x8xf32>
    %cst_14 = arith.constant dense<0.000000e+00> : vector<8xf32>
    %21 = vector.multi_reduction <add>, %20, %cst_14 [1] : vector<8x8xf32> to vector<8xf32>
    %22 = vector.shape_cast %21 : vector<8xf32> to vector<8x1xf32>
    %23 = tpu.reciprocal %22 {approx = true} : vector<8x1xf32> -> vector<8x1xf32>
    %24 = vector.broadcast %23 : vector<8x1xf32> to vector<8x8xf32>
    %25 = arith.mulf %20, %24 : vector<8x8xf32>
    %cst_15 = arith.constant dense<0.000000e+00> : vector<8x32xf32>
    %26 = tpu.matmul %25, %12, %cst_15 {dimension_numbers = #tpu.dot_dimension_numbers<[1], [0], [0], [1], [0, 0, 1, 1], [], []>} : vector<8x8xf32>, vector<8x32xf32>, vector<8x32xf32> -> vector<8x32xf32>
    %27 = vector.extract_strided_slice %1 {offsets = [0, 0], sizes = [128, 32], strides = [1, 1]} : vector<128x128xf32> to vector<128x32xf32>
    %cst_16 = arith.constant dense<0.000000e+00> : vector<8x128xf32>
    %28 = tpu.matmul %26, %27, %cst_16 {dimension_numbers = #tpu.dot_dimension_numbers<[1], [1], [0], [0], [0, 0, 1, 0], [], []>} : vector<8x32xf32>, vector<128x32xf32>, vector<8x128xf32> -> vector<8x128xf32>
    %29 = arith.addf %9, %28 : vector<8x128xf32>
    %30 = vector.extract_strided_slice %8 {offsets = [0, 32], sizes = [8, 32], strides = [1, 1]} : vector<8x384xf32> to vector<8x32xf32>
    %31 = vector.extract_strided_slice %8 {offsets = [0, 160], sizes = [8, 32], strides = [1, 1]} : vector<8x384xf32> to vector<8x32xf32>
    %32 = vector.extract_strided_slice %8 {offsets = [0, 288], sizes = [8, 32], strides = [1, 1]} : vector<8x384xf32> to vector<8x32xf32>
    %cst_17 = arith.constant dense<0.000000e+00> : vector<8x8xf32>
    %33 = tpu.matmul %30, %31, %cst_17 {dimension_numbers = #tpu.dot_dimension_numbers<[1], [1], [0], [0], [0, 0, 1, 0], [], []>} : vector<8x32xf32>, vector<8x32xf32>, vector<8x8xf32> -> vector<8x8xf32>
    %cst_18 = arith.constant 0.176776692 : f32
    %34 = vector.broadcast %cst_18 : f32 to vector<8x8xf32>
    %35 = arith.mulf %33, %34 : vector<8x8xf32>
    %cst_19 = arith.constant dense<0xFF800000> : vector<8xf32>
    %36 = vector.multi_reduction <maximumf>, %35, %cst_19 [1] : vector<8x8xf32> to vector<8xf32>
    %37 = vector.shape_cast %36 : vector<8xf32> to vector<8x1xf32>
    %38 = vector.broadcast %37 : vector<8x1xf32> to vector<8x8xf32>
    %39 = arith.subf %35, %38 : vector<8x8xf32>
    %40 = math.exp %39 : vector<8x8xf32>
    %cst_20 = arith.constant dense<0.000000e+00> : vector<8xf32>
    %41 = vector.multi_reduction <add>, %40, %cst_20 [1] : vector<8x8xf32> to vector<8xf32>
    %42 = vector.shape_cast %41 : vector<8xf32> to vector<8x1xf32>
    %43 = tpu.reciprocal %42 {approx = true} : vector<8x1xf32> -> vector<8x1xf32>
    %44 = vector.broadcast %43 : vector<8x1xf32> to vector<8x8xf32>
    %45 = arith.mulf %40, %44 : vector<8x8xf32>
    %cst_21 = arith.constant dense<0.000000e+00> : vector<8x32xf32>
    %46 = tpu.matmul %45, %32, %cst_21 {dimension_numbers = #tpu.dot_dimension_numbers<[1], [0], [0], [1], [0, 0, 1, 1], [], []>} : vector<8x8xf32>, vector<8x32xf32>, vector<8x32xf32> -> vector<8x32xf32>
    %47 = vector.extract_strided_slice %1 {offsets = [0, 32], sizes = [128, 32], strides = [1, 1]} : vector<128x128xf32> to vector<128x32xf32>
    %cst_22 = arith.constant dense<0.000000e+00> : vector<8x128xf32>
    %48 = tpu.matmul %46, %47, %cst_22 {dimension_numbers = #tpu.dot_dimension_numbers<[1], [1], [0], [0], [0, 0, 1, 0], [], []>} : vector<8x32xf32>, vector<128x32xf32>, vector<8x128xf32> -> vector<8x128xf32>
    %49 = arith.addf %29, %48 : vector<8x128xf32>
    %50 = vector.extract_strided_slice %8 {offsets = [0, 64], sizes = [8, 32], strides = [1, 1]} : vector<8x384xf32> to vector<8x32xf32>
    %51 = vector.extract_strided_slice %8 {offsets = [0, 192], sizes = [8, 32], strides = [1, 1]} : vector<8x384xf32> to vector<8x32xf32>
    %52 = vector.extract_strided_slice %8 {offsets = [0, 320], sizes = [8, 32], strides = [1, 1]} : vector<8x384xf32> to vector<8x32xf32>
    %cst_23 = arith.constant dense<0.000000e+00> : vector<8x8xf32>
    %53 = tpu.matmul %50, %51, %cst_23 {dimension_numbers = #tpu.dot_dimension_numbers<[1], [1], [0], [0], [0, 0, 1, 0], [], []>} : vector<8x32xf32>, vector<8x32xf32>, vector<8x8xf32> -> vector<8x8xf32>
    %cst_24 = arith.constant 0.176776692 : f32
    %54 = vector.broadcast %cst_24 : f32 to vector<8x8xf32>
    %55 = arith.mulf %53, %54 : vector<8x8xf32>
    %cst_25 = arith.constant dense<0xFF800000> : vector<8xf32>
    %56 = vector.multi_reduction <maximumf>, %55, %cst_25 [1] : vector<8x8xf32> to vector<8xf32>
    %57 = vector.shape_cast %56 : vector<8xf32> to vector<8x1xf32>
    %58 = vector.broadcast %57 : vector<8x1xf32> to vector<8x8xf32>
    %59 = arith.subf %55, %58 : vector<8x8xf32>
    %60 = math.exp %59 : vector<8x8xf32>
    %cst_26 = arith.constant dense<0.000000e+00> : vector<8xf32>
    %61 = vector.multi_reduction <add>, %60, %cst_26 [1] : vector<8x8xf32> to vector<8xf32>
    %62 = vector.shape_cast %61 : vector<8xf32> to vector<8x1xf32>
    %63 = tpu.reciprocal %62 {approx = true} : vector<8x1xf32> -> vector<8x1xf32>
    %64 = vector.broadcast %63 : vector<8x1xf32> to vector<8x8xf32>
    %65 = arith.mulf %60, %64 : vector<8x8xf32>
    %cst_27 = arith.constant dense<0.000000e+00> : vector<8x32xf32>
    %66 = tpu.matmul %65, %52, %cst_27 {dimension_numbers = #tpu.dot_dimension_numbers<[1], [0], [0], [1], [0, 0, 1, 1], [], []>} : vector<8x8xf32>, vector<8x32xf32>, vector<8x32xf32> -> vector<8x32xf32>
    %67 = vector.extract_strided_slice %1 {offsets = [0, 64], sizes = [128, 32], strides = [1, 1]} : vector<128x128xf32> to vector<128x32xf32>
    %cst_28 = arith.constant dense<0.000000e+00> : vector<8x128xf32>
    %68 = tpu.matmul %66, %67, %cst_28 {dimension_numbers = #tpu.dot_dimension_numbers<[1], [1], [0], [0], [0, 0, 1, 0], [], []>} : vector<8x32xf32>, vector<128x32xf32>, vector<8x128xf32> -> vector<8x128xf32>
    %69 = arith.addf %49, %68 : vector<8x128xf32>
    %70 = vector.extract_strided_slice %8 {offsets = [0, 96], sizes = [8, 32], strides = [1, 1]} : vector<8x384xf32> to vector<8x32xf32>
    %71 = vector.extract_strided_slice %8 {offsets = [0, 224], sizes = [8, 32], strides = [1, 1]} : vector<8x384xf32> to vector<8x32xf32>
    %72 = vector.extract_strided_slice %8 {offsets = [0, 352], sizes = [8, 32], strides = [1, 1]} : vector<8x384xf32> to vector<8x32xf32>
    %cst_29 = arith.constant dense<0.000000e+00> : vector<8x8xf32>
    %73 = tpu.matmul %70, %71, %cst_29 {dimension_numbers = #tpu.dot_dimension_numbers<[1], [1], [0], [0], [0, 0, 1, 0], [], []>} : vector<8x32xf32>, vector<8x32xf32>, vector<8x8xf32> -> vector<8x8xf32>
    %cst_30 = arith.constant 0.176776692 : f32
    %74 = vector.broadcast %cst_30 : f32 to vector<8x8xf32>
    %75 = arith.mulf %73, %74 : vector<8x8xf32>
    %cst_31 = arith.constant dense<0xFF800000> : vector<8xf32>
    %76 = vector.multi_reduction <maximumf>, %75, %cst_31 [1] : vector<8x8xf32> to vector<8xf32>
    %77 = vector.shape_cast %76 : vector<8xf32> to vector<8x1xf32>
    %78 = vector.broadcast %77 : vector<8x1xf32> to vector<8x8xf32>
    %79 = arith.subf %75, %78 : vector<8x8xf32>
    %80 = math.exp %79 : vector<8x8xf32>
    %cst_32 = arith.constant dense<0.000000e+00> : vector<8xf32>
    %81 = vector.multi_reduction <add>, %80, %cst_32 [1] : vector<8x8xf32> to vector<8xf32>
    %82 = vector.shape_cast %81 : vector<8xf32> to vector<8x1xf32>
    %83 = tpu.reciprocal %82 {approx = true} : vector<8x1xf32> -> vector<8x1xf32>
    %84 = vector.broadcast %83 : vector<8x1xf32> to vector<8x8xf32>
    %85 = arith.mulf %80, %84 : vector<8x8xf32>
    %cst_33 = arith.constant dense<0.000000e+00> : vector<8x32xf32>
    %86 = tpu.matmul %85, %72, %cst_33 {dimension_numbers = #tpu.dot_dimension_numbers<[1], [0], [0], [1], [0, 0, 1, 1], [], []>} : vector<8x8xf32>, vector<8x32xf32>, vector<8x32xf32> -> vector<8x32xf32>
    %87 = vector.extract_strided_slice %1 {offsets = [0, 96], sizes = [128, 32], strides = [1, 1]} : vector<128x128xf32> to vector<128x32xf32>
    %cst_34 = arith.constant dense<0.000000e+00> : vector<8x128xf32>
    %88 = tpu.matmul %86, %87, %cst_34 {dimension_numbers = #tpu.dot_dimension_numbers<[1], [1], [0], [0], [0, 0, 1, 0], [], []>} : vector<8x32xf32>, vector<128x32xf32>, vector<8x128xf32> -> vector<8x128xf32>
    %89 = arith.addf %69, %88 : vector<8x128xf32>
    %90 = vector.broadcast %3 : vector<1x128xf32> to vector<8x128xf32>
    %91 = arith.addf %89, %90 : vector<8x128xf32>
    %c0_35 = arith.constant 0 : index
    %c0_36 = arith.constant 0 : index
    %c0_37 = arith.constant 0 : index
    %92 = vector.load %arg6[%c0_35, %c0_36, %c0_37] : memref<8x2x128xf32, #tpu.memory_space<vmem>>, vector<8x1x128xf32>
    %93 = vector.shape_cast %92 : vector<8x1x128xf32> to vector<8x128xf32>
    %94 = vector.shape_cast %91 : vector<8x128xf32> to vector<8x1x128xf32>
    tpu.vector_store %arg6[%c0_35, %c0_36, %c0_37], %94 {strides = array<i32>} : memref<8x2x128xf32, #tpu.memory_space<vmem>>, vector<8x1x128xf32>,
    %c0_38 = arith.constant 0 : index
    %c1 = arith.constant 1 : index
    %c0_39 = arith.constant 0 : index
    %95 = vector.load %arg1[%c0_38, %c1, %c0_39] : memref<8x2x128xf32, #tpu.memory_space<vmem>>, vector<8x1x128xf32>
    %96 = vector.shape_cast %95 : vector<8x1x128xf32> to vector<8x128xf32>
    %cst_40 = arith.constant dense<0.000000e+00> : vector<8x384xf32>
    %97 = tpu.matmul %96, %0, %cst_40 {dimension_numbers = #tpu.dot_dimension_numbers<[1], [1], [0], [0], [0, 0, 1, 0], [], []>} : vector<8x128xf32>, vector<384x128xf32>, vector<8x384xf32> -> vector<8x384xf32>
    %98 = vector.broadcast %2 : vector<1x384xf32> to vector<8x384xf32>
    %99 = arith.addf %97, %98 : vector<8x384xf32>
    %cst_41 = arith.constant 0.000000e+00 : f32
    %100 = vector.broadcast %cst_41 : f32 to vector<8x128xf32>
    %101 = vector.extract_strided_slice %99 {offsets = [0, 0], sizes = [8, 32], strides = [1, 1]} : vector<8x384xf32> to vector<8x32xf32>
    %102 = vector.extract_strided_slice %99 {offsets = [0, 128], sizes = [8, 32], strides = [1, 1]} : vector<8x384xf32> to vector<8x32xf32>
    %103 = vector.extract_strided_slice %99 {offsets = [0, 256], sizes = [8, 32], strides = [1, 1]} : vector<8x384xf32> to vector<8x32xf32>
    %cst_42 = arith.constant dense<0.000000e+00> : vector<8x8xf32>
    %104 = tpu.matmul %101, %102, %cst_42 {dimension_numbers = #tpu.dot_dimension_numbers<[1], [1], [0], [0], [0, 0, 1, 0], [], []>} : vector<8x32xf32>, vector<8x32xf32>, vector<8x8xf32> -> vector<8x8xf32>
    %cst_43 = arith.constant 0.176776692 : f32
    %105 = vector.broadcast %cst_43 : f32 to vector<8x8xf32>
    %106 = arith.mulf %104, %105 : vector<8x8xf32>
    %cst_44 = arith.constant dense<0xFF800000> : vector<8xf32>
    %107 = vector.multi_reduction <maximumf>, %106, %cst_44 [1] : vector<8x8xf32> to vector<8xf32>
    %108 = vector.shape_cast %107 : vector<8xf32> to vector<8x1xf32>
    %109 = vector.broadcast %108 : vector<8x1xf32> to vector<8x8xf32>
    %110 = arith.subf %106, %109 : vector<8x8xf32>
    %111 = math.exp %110 : vector<8x8xf32>
    %cst_45 = arith.constant dense<0.000000e+00> : vector<8xf32>
    %112 = vector.multi_reduction <add>, %111, %cst_45 [1] : vector<8x8xf32> to vector<8xf32>
    %113 = vector.shape_cast %112 : vector<8xf32> to vector<8x1xf32>
    %114 = tpu.reciprocal %113 {approx = true} : vector<8x1xf32> -> vector<8x1xf32>
    %115 = vector.broadcast %114 : vector<8x1xf32> to vector<8x8xf32>
    %116 = arith.mulf %111, %115 : vector<8x8xf32>
    %cst_46 = arith.constant dense<0.000000e+00> : vector<8x32xf32>
    %117 = tpu.matmul %116, %103, %cst_46 {dimension_numbers = #tpu.dot_dimension_numbers<[1], [0], [0], [1], [0, 0, 1, 1], [], []>} : vector<8x8xf32>, vector<8x32xf32>, vector<8x32xf32> -> vector<8x32xf32>
    %118 = vector.extract_strided_slice %1 {offsets = [0, 0], sizes = [128, 32], strides = [1, 1]} : vector<128x128xf32> to vector<128x32xf32>
    %cst_47 = arith.constant dense<0.000000e+00> : vector<8x128xf32>
    %119 = tpu.matmul %117, %118, %cst_47 {dimension_numbers = #tpu.dot_dimension_numbers<[1], [1], [0], [0], [0, 0, 1, 0], [], []>} : vector<8x32xf32>, vector<128x32xf32>, vector<8x128xf32> -> vector<8x128xf32>
    %120 = arith.addf %100, %119 : vector<8x128xf32>
    %121 = vector.extract_strided_slice %99 {offsets = [0, 32], sizes = [8, 32], strides = [1, 1]} : vector<8x384xf32> to vector<8x32xf32>
    %122 = vector.extract_strided_slice %99 {offsets = [0, 160], sizes = [8, 32], strides = [1, 1]} : vector<8x384xf32> to vector<8x32xf32>
    %123 = vector.extract_strided_slice %99 {offsets = [0, 288], sizes = [8, 32], strides = [1, 1]} : vector<8x384xf32> to vector<8x32xf32>
    %cst_48 = arith.constant dense<0.000000e+00> : vector<8x8xf32>
    %124 = tpu.matmul %121, %122, %cst_48 {dimension_numbers = #tpu.dot_dimension_numbers<[1], [1], [0], [0], [0, 0, 1, 0], [], []>} : vector<8x32xf32>, vector<8x32xf32>, vector<8x8xf32> -> vector<8x8xf32>
    %cst_49 = arith.constant 0.176776692 : f32
    %125 = vector.broadcast %cst_49 : f32 to vector<8x8xf32>
    %126 = arith.mulf %124, %125 : vector<8x8xf32>
    %cst_50 = arith.constant dense<0xFF800000> : vector<8xf32>
    %127 = vector.multi_reduction <maximumf>, %126, %cst_50 [1] : vector<8x8xf32> to vector<8xf32>
    %128 = vector.shape_cast %127 : vector<8xf32> to vector<8x1xf32>
    %129 = vector.broadcast %128 : vector<8x1xf32> to vector<8x8xf32>
    %130 = arith.subf %126, %129 : vector<8x8xf32>
    %131 = math.exp %130 : vector<8x8xf32>
    %cst_51 = arith.constant dense<0.000000e+00> : vector<8xf32>
    %132 = vector.multi_reduction <add>, %131, %cst_51 [1] : vector<8x8xf32> to vector<8xf32>
    %133 = vector.shape_cast %132 : vector<8xf32> to vector<8x1xf32>
    %134 = tpu.reciprocal %133 {approx = true} : vector<8x1xf32> -> vector<8x1xf32>
    %135 = vector.broadcast %134 : vector<8x1xf32> to vector<8x8xf32>
    %136 = arith.mulf %131, %135 : vector<8x8xf32>
    %cst_52 = arith.constant dense<0.000000e+00> : vector<8x32xf32>
    %137 = tpu.matmul %136, %123, %cst_52 {dimension_numbers = #tpu.dot_dimension_numbers<[1], [0], [0], [1], [0, 0, 1, 1], [], []>} : vector<8x8xf32>, vector<8x32xf32>, vector<8x32xf32> -> vector<8x32xf32>
    %138 = vector.extract_strided_slice %1 {offsets = [0, 32], sizes = [128, 32], strides = [1, 1]} : vector<128x128xf32> to vector<128x32xf32>
    %cst_53 = arith.constant dense<0.000000e+00> : vector<8x128xf32>
    %139 = tpu.matmul %137, %138, %cst_53 {dimension_numbers = #tpu.dot_dimension_numbers<[1], [1], [0], [0], [0, 0, 1, 0], [], []>} : vector<8x32xf32>, vector<128x32xf32>, vector<8x128xf32> -> vector<8x128xf32>
    %140 = arith.addf %120, %139 : vector<8x128xf32>
    %141 = vector.extract_strided_slice %99 {offsets = [0, 64], sizes = [8, 32], strides = [1, 1]} : vector<8x384xf32> to vector<8x32xf32>
    %142 = vector.extract_strided_slice %99 {offsets = [0, 192], sizes = [8, 32], strides = [1, 1]} : vector<8x384xf32> to vector<8x32xf32>
    %143 = vector.extract_strided_slice %99 {offsets = [0, 320], sizes = [8, 32], strides = [1, 1]} : vector<8x384xf32> to vector<8x32xf32>
    %cst_54 = arith.constant dense<0.000000e+00> : vector<8x8xf32>
    %144 = tpu.matmul %141, %142, %cst_54 {dimension_numbers = #tpu.dot_dimension_numbers<[1], [1], [0], [0], [0, 0, 1, 0], [], []>} : vector<8x32xf32>, vector<8x32xf32>, vector<8x8xf32> -> vector<8x8xf32>
    %cst_55 = arith.constant 0.176776692 : f32
    %145 = vector.broadcast %cst_55 : f32 to vector<8x8xf32>
    %146 = arith.mulf %144, %145 : vector<8x8xf32>
    %cst_56 = arith.constant dense<0xFF800000> : vector<8xf32>
    %147 = vector.multi_reduction <maximumf>, %146, %cst_56 [1] : vector<8x8xf32> to vector<8xf32>
    %148 = vector.shape_cast %147 : vector<8xf32> to vector<8x1xf32>
    %149 = vector.broadcast %148 : vector<8x1xf32> to vector<8x8xf32>
    %150 = arith.subf %146, %149 : vector<8x8xf32>
    %151 = math.exp %150 : vector<8x8xf32>
    %cst_57 = arith.constant dense<0.000000e+00> : vector<8xf32>
    %152 = vector.multi_reduction <add>, %151, %cst_57 [1] : vector<8x8xf32> to vector<8xf32>
    %153 = vector.shape_cast %152 : vector<8xf32> to vector<8x1xf32>
    %154 = tpu.reciprocal %153 {approx = true} : vector<8x1xf32> -> vector<8x1xf32>
    %155 = vector.broadcast %154 : vector<8x1xf32> to vector<8x8xf32>
    %156 = arith.mulf %151, %155 : vector<8x8xf32>
    %cst_58 = arith.constant dense<0.000000e+00> : vector<8x32xf32>
    %157 = tpu.matmul %156, %143, %cst_58 {dimension_numbers = #tpu.dot_dimension_numbers<[1], [0], [0], [1], [0, 0, 1, 1], [], []>} : vector<8x8xf32>, vector<8x32xf32>, vector<8x32xf32> -> vector<8x32xf32>
    %158 = vector.extract_strided_slice %1 {offsets = [0, 64], sizes = [128, 32], strides = [1, 1]} : vector<128x128xf32> to vector<128x32xf32>
    %cst_59 = arith.constant dense<0.000000e+00> : vector<8x128xf32>
    %159 = tpu.matmul %157, %158, %cst_59 {dimension_numbers = #tpu.dot_dimension_numbers<[1], [1], [0], [0], [0, 0, 1, 0], [], []>} : vector<8x32xf32>, vector<128x32xf32>, vector<8x128xf32> -> vector<8x128xf32>
    %160 = arith.addf %140, %159 : vector<8x128xf32>
    %161 = vector.extract_strided_slice %99 {offsets = [0, 96], sizes = [8, 32], strides = [1, 1]} : vector<8x384xf32> to vector<8x32xf32>
    %162 = vector.extract_strided_slice %99 {offsets = [0, 224], sizes = [8, 32], strides = [1, 1]} : vector<8x384xf32> to vector<8x32xf32>
    %163 = vector.extract_strided_slice %99 {offsets = [0, 352], sizes = [8, 32], strides = [1, 1]} : vector<8x384xf32> to vector<8x32xf32>
    %cst_60 = arith.constant dense<0.000000e+00> : vector<8x8xf32>
    %164 = tpu.matmul %161, %162, %cst_60 {dimension_numbers = #tpu.dot_dimension_numbers<[1], [1], [0], [0], [0, 0, 1, 0], [], []>} : vector<8x32xf32>, vector<8x32xf32>, vector<8x8xf32> -> vector<8x8xf32>
    %cst_61 = arith.constant 0.176776692 : f32
    %165 = vector.broadcast %cst_61 : f32 to vector<8x8xf32>
    %166 = arith.mulf %164, %165 : vector<8x8xf32>
    %cst_62 = arith.constant dense<0xFF800000> : vector<8xf32>
    %167 = vector.multi_reduction <maximumf>, %166, %cst_62 [1] : vector<8x8xf32> to vector<8xf32>
    %168 = vector.shape_cast %167 : vector<8xf32> to vector<8x1xf32>
    %169 = vector.broadcast %168 : vector<8x1xf32> to vector<8x8xf32>
    %170 = arith.subf %166, %169 : vector<8x8xf32>
    %171 = math.exp %170 : vector<8x8xf32>
    %cst_63 = arith.constant dense<0.000000e+00> : vector<8xf32>
    %172 = vector.multi_reduction <add>, %171, %cst_63 [1] : vector<8x8xf32> to vector<8xf32>
    %173 = vector.shape_cast %172 : vector<8xf32> to vector<8x1xf32>
    %174 = tpu.reciprocal %173 {approx = true} : vector<8x1xf32> -> vector<8x1xf32>
    %175 = vector.broadcast %174 : vector<8x1xf32> to vector<8x8xf32>
    %176 = arith.mulf %171, %175 : vector<8x8xf32>
    %cst_64 = arith.constant dense<0.000000e+00> : vector<8x32xf32>
    %177 = tpu.matmul %176, %163, %cst_64 {dimension_numbers = #tpu.dot_dimension_numbers<[1], [0], [0], [1], [0, 0, 1, 1], [], []>} : vector<8x8xf32>, vector<8x32xf32>, vector<8x32xf32> -> vector<8x32xf32>
    %178 = vector.extract_strided_slice %1 {offsets = [0, 96], sizes = [128, 32], strides = [1, 1]} : vector<128x128xf32> to vector<128x32xf32>
    %cst_65 = arith.constant dense<0.000000e+00> : vector<8x128xf32>
    %179 = tpu.matmul %177, %178, %cst_65 {dimension_numbers = #tpu.dot_dimension_numbers<[1], [1], [0], [0], [0, 0, 1, 0], [], []>} : vector<8x32xf32>, vector<128x32xf32>, vector<8x128xf32> -> vector<8x128xf32>
    %180 = arith.addf %160, %179 : vector<8x128xf32>
    %181 = vector.broadcast %3 : vector<1x128xf32> to vector<8x128xf32>
    %182 = arith.addf %180, %181 : vector<8x128xf32>
    %c0_66 = arith.constant 0 : index
    %c1_67 = arith.constant 1 : index
    %c0_68 = arith.constant 0 : index
    %183 = vector.load %arg6[%c0_66, %c1_67, %c0_68] : memref<8x2x128xf32, #tpu.memory_space<vmem>>, vector<8x1x128xf32>
    %184 = vector.shape_cast %183 : vector<8x1x128xf32> to vector<8x128xf32>
    %185 = vector.shape_cast %182 : vector<8x128xf32> to vector<8x1x128xf32>
    tpu.vector_store %arg6[%c0_66, %c1_67, %c0_68], %185 {strides = array<i32>} : memref<8x2x128xf32, #tpu.memory_space<vmem>>, vector<8x1x128xf32>,
    return
  }
  func.func @transform_0(%arg0: i32) -> (i32, i32, i32) {
    %c0_i32 = arith.constant 0 : i32
    %c0_i32_0 = arith.constant 0 : i32
    %c0_i32_1 = arith.constant 0 : i32
    %c0_i32_2 = arith.constant 0 : i32
    return %c0_i32, %c0_i32_0, %c0_i32_1 : i32, i32, i32
  }
  func.func @transform_1(%arg0: i32) -> (i32, i32) {
    %c0_i32 = arith.constant 0 : i32
    %c0_i32_0 = arith.constant 0 : i32
    %c0_i32_1 = arith.constant 0 : i32
    return %c0_i32, %c0_i32_0 : i32, i32
  }
  func.func @transform_2(%arg0: i32) -> (i32, i32) {
    %c0_i32 = arith.constant 0 : i32
    %c0_i32_0 = arith.constant 0 : i32
    %c0_i32_1 = arith.constant 0 : i32
    return %c0_i32, %c0_i32_0 : i32, i32
  }
  func.func @transform_3(%arg0: i32) -> (i32, i32) {
    %c0_i32 = arith.constant 0 : i32
    %c0_i32_0 = arith.constant 0 : i32
    %c0_i32_1 = arith.constant 0 : i32
    return %c0_i32, %c0_i32_0 : i32, i32
  }
  func.func @transform_4(%arg0: i32) -> (i32, i32) {
    %c0_i32 = arith.constant 0 : i32
    %c0_i32_0 = arith.constant 0 : i32
    %c0_i32_1 = arith.constant 0 : i32
    return %c0_i32, %c0_i32_0 : i32, i32
  }
  func.func @transform_5(%arg0: i32) -> (i32, i32, i32) {
    %c0_i32 = arith.constant 0 : i32
    %c0_i32_0 = arith.constant 0 : i32
    %c0_i32_1 = arith.constant 0 : i32
    %c0_i32_2 = arith.constant 0 : i32
    return %c0_i32, %c0_i32_0, %c0_i32_1 : i32, i32, i32
  }
}

</mosaic_0001>

<bundles_post_ra>
// kernel: tpu_custom_call.1
= control target key start
LH: loop header
LB: loop body
LE: loop exit
PB: predicated region body
PF: predicated region fallthrough
CT: control target
= control target key end

     0   :  { %10 = vsyncpa [#allocation3], 0  ;;  %s4952_s0 = inlined_call_operand.hbm [shape: f32[8,2,128], index: 0, kind: input, shape index: {}]   ;;  %s4953_s1 = inlined_call_operand.hbm [shape: f32[384,128], index: 1, kind: input, shape index: {}]   ;;  %s4954_s2 = inlined_call_operand.vmem [shape: f32[1,384], index: 2, kind: input, shape index: {}]   ;;  %s4955_s3 = inlined_call_operand.hbm [shape: f32[128,128], index: 3, kind: input, shape index: {}]   ;;  %s4956_s4 = inlined_call_operand.vmem [shape: f32[1,128], index: 4, kind: input, shape index: {}]   ;;  %s4957_s5 = inlined_call_operand.hbm [shape: f32[8,2,128], index: 5, kind: output, shape index: {}]  }
   0x1   :  { %11 = vsyncpa [#allocation6], 0 }
   0x2   :  { %12 = vsyncpa [#allocation4], 0  ;;  %s3819_s18 = smov [#allocation5]  }
   0x3   :  { %s30_s19 = sshll.u32 %s3819_s18, 4  ;;  %s31_s19 = int_to_ptr.vmem [resolvable:$true] %s30_s19 }
   0x4   :  { %s3741_s20 = scalar_lea.vmem %s31_s19, 6144  ;;  %p3746_p1 = scmp.lt.s32.totalorder %s31_s19, %s31_s19 }
   0x5   :  { %p3742_p0 = scmp.ne.s32.totalorder %s31_s19, %s3741_s20  ;;  %p3747_p2 = scmp.lt.s32.totalorder %s3741_s20, %s3741_s20 }
   0x7   :  { %p3748_p3 = por %p3747_p2, %p3746_p1 }
   0x9   :  { %p3749_p4 = pnand %p3748_p3, %p3742_p0 }
   0xb   :  { %3752 = shalt.err (!%p3749_p4)
}
   0xc   :  { %s3820_s21 = smov 128   ;;  %s3821_s22 = smov 8  }
   0xd   :  { %36 = dma.hbm_to_vmem [thread:$0]  %s4953_s1, 6144, %s31_s19, [#allocation6], %s3820_s21, %s3820_s21, %s3821_s22  }
   0xe   :  { %s3822_s25 = smov [#allocation2]  }
   0xf   :  { %s18_s26 = sshll.u32 %s3822_s25, 4  ;;  %s19_s26 = int_to_ptr.vmem [resolvable:$true] %s18_s26 }
  0x10   :  { %s3761_s27 = scalar_lea.vmem %s19_s26, 256  ;;  %p3766_p6 = scmp.lt.s32.totalorder %s19_s26, %s19_s26 }
  0x11   :  { %p3762_p5 = scmp.ne.s32.totalorder %s19_s26, %s3761_s27  ;;  %p3767_p7 = scmp.lt.s32.totalorder %s3761_s27, %s3761_s27 }
  0x13   :  { %p3768_p8 = por %p3767_p7, %p3766_p6 }
  0x15   :  { %p3769_p9 = pnand %p3768_p8, %p3762_p5 }
  0x17   :  { %3772 = shalt.err (!%p3769_p9)
}
  0x18   :  { %s3823_s28 = smov 32   ;;  %s3824_s29 = smov 2  }
  0x19   :  { %24 = dma.hbm_to_vmem [thread:$0]  %s4952_s0, 256, %s19_s26, [#allocation3], %s3823_s28, %s3823_s28, %s3824_s29  }
  0x1a   :  { %s3825_s1 = smov [#allocation7]  }
  0x1b   :  { %s44_s7 = sshll.u32 %s3825_s1, 4  ;;  %s45_s7 = int_to_ptr.vmem [resolvable:$true] %s44_s7 }
  0x1c   :  { %s3781_s8 = scalar_lea.vmem %s45_s7, 2048  ;;  %p3786_p11 = scmp.lt.s32.totalorder %s45_s7, %s45_s7 }
  0x1d   :  { %p3782_p10 = scmp.ne.s32.totalorder %s45_s7, %s3781_s8  ;;  %p3787_p12 = scmp.lt.s32.totalorder %s3781_s8, %s3781_s8 }
  0x1f   :  { %p3788_p13 = por %p3787_p12, %p3786_p11 }
  0x21   :  { %p3789_p0 = pnand %p3788_p13, %p3782_p10 }
  0x23   :  { %3792 = shalt.err (!%p3789_p0)
}
  0x24   :  { %50 = dma.hbm_to_vmem [thread:$0]  %s4955_s3, 2048, %s45_s7, [#allocation6], %s3820_s21, %s3820_s21, %s3821_s22  }
  0x25   :  { %3813 = dma.done.wait [#allocation3], 256  }
  0x26   :  { %3814 = vsyncadd [#allocation3], 4294967040 }
  0x27   :  { %3815 = dma.done.wait [#allocation6], 8192  }
  0x28   :  { %3816 = vsyncadd [#allocation6], 4294959104  ;;  %v3874_v0 = vld [vmem:[#allocation5 + $0xf8] sm:$0xff]  ;;  %v3878_v2 = vld [vmem:[#allocation5 + $0xf0] sm:$0xff]  ;;  %vm161_vm0 = vcmask 1041409   ;;  %vm164_vm1 = vcmask 1042434   ;;  %v137_v55 = vlaneseq }
  0x29   :  { %v3876_v1 = vld [vmem:[#allocation5 + $0x78] sm:$0xff]  ;;  %2972 = vmatprep.subr.mxu0 %v3874_v0  ;;  %v3883_v3 = vld [vmem:[#allocation5 + $0x70] sm:$0xff]  ;;  %v3885_v4 = vld [vmem:[#allocation5 + $0xe8] sm:$0xff]  ;;  %vm167_vm2 = vcmask 1043459   ;;  %vm170_vm3 = vcmask 1044484   ;;  %vm173_vm4 = vcmask 1045509  }
  0x2a   :  { %2973 = vmatpush3.xpose.msra.mxu0 %v3876_v1  ;;  %v3889_v5 = vld [vmem:[#allocation5 + $0x68] sm:$0xff]  ;;  %v3891_v6 = vld [vmem:[#allocation5 + $0xe0] sm:$0xff]  ;;  %v3896_v8 = vld [vmem:[#allocation5 + $0xd8] sm:$0xff]  ;;  %vm176_vm5 = vcmask 1046534   ;;  %vm179_vm6 = vcmask 1047559   ;;  %v4960_v54 = vmov 0.0  }
  0x2b   :  { %2974 = vmatprep.subr.mxu0 %v3878_v2  ;;  %v3894_v7 = vld [vmem:[#allocation5 + $0x60] sm:$0xff]  ;;  %v129_v9 = vld [vmem:[#allocation2 + $0x2] sm:$0x1]  ;;  %v130_v10 = vld [vmem:[#allocation2 + $0x4] sm:$0x1]  ;;  %3242 = vmatprep.subr.mxu1 %v4960_v54  ;;  %vm3827_vm7 = vmmov 0  }
  0x2c   :  { %v131_v11 = vld [vmem:[#allocation2 + $0x6] sm:$0x1]  ;;  %v128_v12 = vld [vmem:[#allocation2] sm:$0x1]  ;;  %v132_v13 = vld [vmem:[#allocation2 + $0x8] sm:$0x1]  ;;  %3274 = vmatprep.mubr.msk.f32.mxu1 %vm3827_vm7, %v4960_v54 }
  0x2d   :  { %v133_v14 = vld [vmem:[#allocation2 + $0xa] sm:$0x1]  ;;  %v134_v15 = vld [vmem:[#allocation2 + $0xc] sm:$0x1]  ;;  %v160_v16 = vrot.slane %v129_v9, 7  ;;  %v163_v17 = vrot.slane %v130_v10, 6 }
  0x2e   :  { %2975 = vmatpush3.xpose.msra.mxu0 %v3883_v3  ;;  %v166_v18 = vrot.slane %v131_v11, 5  ;;  %v135_v19 = vld [vmem:[#allocation2 + $0xe] sm:$0x1]  ;;  %v169_v20 = vrot.slane %v132_v13, 4  ;;  %v172_v23 = vrot.slane %v133_v14, 3  ;;  %v3904_v24 = vld [vmem:[#allocation5 + $0xd0] sm:$0xff] }
  0x2f   :  { %2976 = vmatprep.subr.mxu0 %v3885_v4  ;;  %v3901_v21 = vld [vmem:[#allocation5 + $0x58] sm:$0xff]  ;;  %v162_v22 = vsel %vm161_vm0, %v160_v16, %v128_v12  ;;  %v175_v26 = vrot.slane %v134_v15, 2  ;;  %v178_v28 = vrot.slane %v135_v19, 1  ;;  %v3911_v30 = vld [vmem:[#allocation5 + $0x50] sm:$0xff]  ;;  %v3914_v32 = vld [vmem:[#allocation5 + $0xc8] sm:$0xff]  ;;  %v3987_v56 = vshrl.u32 %v137_v55, 7 }
  0x30   :  { %v165_v25 = vsel %vm164_vm1, %v163_v17, %v162_v22  ;;  %v3923_v35 = vld [vmem:[#allocation5 + $0x48] sm:$0xff]  ;;  %v3925_v36 = vld [vmem:[#allocation5 + $0xc0] sm:$0xff]  ;;  %v3931_v38 = vld [vmem:[#allocation5 + $0xb8] sm:$0xff]  ;;  %vm323_vm8 = vcmask 261120   ;;  %s3828_s11 = smov 96   ;;  %vm401_vm9 = vcmask 64512  }
  0x31   :  { %v168_v27 = vsel %vm167_vm2, %v166_v18, %v165_v25  ;;  %v3929_v37 = vld [vmem:[#allocation5 + $0x40] sm:$0xff]  ;;  %v3935_v39 = vld [vmem:[#allocation5 + $0x38] sm:$0xff]  ;;  %v3937_v40 = vld [vmem:[#allocation5 + $0xb0] sm:$0xff]  ;;  %5017 = vst [vmem:[#allocation12_spill] sm:$0xff] %v3987_v56  ;;  %v143_v57 = vsub.s32 1, %v3987_v56  ;;  %v139_v59 = vsub.s32 0, %v3987_v56 }
  0x32   :  { %2977 = vmatpush3.xpose.msra.mxu0 %v3889_v5  ;;  %v171_v29 = vsel %vm170_vm3, %v169_v20, %v168_v27  ;;  %v3941_v41 = vld [vmem:[#allocation5 + $0x30] sm:$0xff]  ;;  %v3943_v42 = vld [vmem:[#allocation5 + $0xa8] sm:$0xff]  ;;  %v3949_v44 = vld [vmem:[#allocation5 + $0xa0] sm:$0xff] }
  0x33   :  { %2978 = vmatprep.subr.mxu0 %v3891_v6  ;;  %v174_v31 = vsel %vm173_vm4, %v172_v23, %v171_v29  ;;  %v3947_v43 = vld [vmem:[#allocation5 + $0x28] sm:$0xff]  ;;  %v3953_v45 = vld [vmem:[#allocation5 + $0x20] sm:$0xff]  ;;  %v3955_v46 = vld [vmem:[#allocation5 + $0x98] sm:$0xff] }
  0x34   :  { %v177_v33 = vsel %vm176_vm5, %v175_v26, %v174_v31  ;;  %v3959_v47 = vld [vmem:[#allocation5 + $0x18] sm:$0xff]  ;;  %v3961_v48 = vld [vmem:[#allocation5 + $0x90] sm:$0xff]  ;;  %v3967_v50 = vld [vmem:[#allocation5 + $0x88] sm:$0xff] }
  0x35   :  { %v3918_v34 = vsel %vm179_vm6, %v178_v28, %v177_v33  ;;  %v3965_v49 = vld [vmem:[#allocation5 + $0x10] sm:$0xff]  ;;  %v3971_v51 = vld [vmem:[#allocation5 + $0x8] sm:$0xff]  ;;  %v3973_v52 = vld [vmem:[#allocation5 + $0x80] sm:$0xff] }
  0x36   :  { %2979 = vmatpush3.xpose.msra.mxu0 %v3894_v7  ;;  %3004 = vmatprep.mubr.f32.mxu0 %v3918_v34  ;;  %v3977_v53 = vld [vmem:[#allocation5] sm:$0xff]  ;;  %v3993_v58 = vld [vmem:[%s4954_s2] sm:$0x7]  ;;  %v4019_v11 = vld [vmem:[#allocation5 + $0x178] sm:$0xff]  ;;  %s3829_s2 = smov 64  }
  0x37   :  { %2980 = vmatprep.subr.mxu0 %v3896_v8  ;;  %v3997_v60 = vrot.slane %v3993_v58, %v143_v57  ;;  %v4000_v62 = vrot.slane %v3993_v58, %v139_v59  ;;  %5020 = vst [vmem:[#allocation15_spill] sm:$0xff] %v4019_v11  ;;  %3243 = vmatpush3.xpose.msra.mxu1 %v4019_v11  ;;  %v4023_v12 = vld [vmem:[#allocation5 + $0x170] sm:$0xff]  ;;  %v4027_v13 = vld [vmem:[#allocation5 + $0x168] sm:$0xff]  ;;  %v4031_v14 = vld [vmem:[#allocation5 + $0x160] sm:$0xff] }
  0x38   :  { %3244 = vmatprep.subr.mxu1 %v4960_v54  ;;  %5021 = vst [vmem:[#allocation16_spill] sm:$0xff] %v4023_v12  ;;  %5022 = vst [vmem:[#allocation17_spill] sm:$0xff] %v4027_v13  ;;  %v4035_v15 = vld [vmem:[#allocation5 + $0x158] sm:$0xff]  ;;  %v4039_v16 = vld [vmem:[#allocation5 + $0x150] sm:$0xff] }
  0x39   :  { %5018 = vst [vmem:[#allocation13_spill] sm:$0xff] %v3997_v60  ;;  %5019 = vst [vmem:[#allocation14_spill] sm:$0xff] %v4000_v62  ;;  %v4043_v17 = vld [vmem:[#allocation5 + $0x148] sm:$0xff]  ;;  %v4047_v18 = vld [vmem:[#allocation5 + $0x140] sm:$0xff] }
  0x3a   :  { %2981 = vmatpush3.xpose.msra.mxu0 %v3901_v21  ;;  %5023 = vst [vmem:[#allocation18_spill] sm:$0xff] %v4031_v14  ;;  %5024 = vst [vmem:[#allocation19_spill] sm:$0xff] %v4035_v15  ;;  %v4051_v19 = vld [vmem:[#allocation5 + $0x138] sm:$0xff]  ;;  %v4055_v20 = vld [vmem:[#allocation5 + $0x130] sm:$0xff] }
  0x3b   :  { %2982 = vmatprep.subr.mxu0 %v3904_v24  ;;  %3245 = vmatpush3.xpose.msra.mxu1 %v4023_v12  ;;  %5025 = vst [vmem:[#allocation20_spill] sm:$0xff] %v4039_v16  ;;  %5026 = vst [vmem:[#allocation21_spill] sm:$0xff] %v4043_v17  ;;  %v4059_v22 = vld [vmem:[#allocation5 + $0x128] sm:$0xff]  ;;  %v4063_v23 = vld [vmem:[#allocation5 + $0x120] sm:$0xff] }
  0x3c   :  { %3246 = vmatprep.subr.mxu1 %v4960_v54  ;;  %5027 = vst [vmem:[#allocation22_spill] sm:$0xff] %v4047_v18  ;;  %5028 = vst [vmem:[#allocation23_spill] sm:$0xff] %v4051_v19  ;;  %v4067_v25 = vld [vmem:[#allocation5 + $0x118] sm:$0xff]  ;;  %v4071_v26 = vld [vmem:[#allocation5 + $0x110] sm:$0xff] }
  0x3d   :  { %5029 = vst [vmem:[#allocation24_spill] sm:$0xff] %v4055_v20  ;;  %5030 = vst [vmem:[#allocation25_spill] sm:$0xff] %v4059_v22  ;;  %v4075_v27 = vld [vmem:[#allocation5 + $0x108] sm:$0xff]  ;;  %v4079_v28 = vld [vmem:[#allocation5 + $0x100] sm:$0xff] }
  0x3e   :  { %2983 = vmatpush3.xpose.msra.mxu0 %v3911_v30  ;;  %5031 = vst [vmem:[#allocation26_spill] sm:$0xff] %v4063_v23  ;;  %5032 = vst [vmem:[#allocation27_spill] sm:$0xff] %v4067_v25  ;;  %v1596_v11 = vld [vmem:[#allocation2 + $0x9] sm:$0x1] }
  0x3f   :  { %2984 = vmatprep.subr.mxu0 %v3914_v32  ;;  %3247 = vmatpush3.xpose.msra.mxu1 %v4027_v13  ;;  %5033 = vst [vmem:[#allocation28_spill] sm:$0xff] %v4071_v26  ;;  %5034 = vst [vmem:[#allocation29_spill] sm:$0xff] %v4075_v27 }
  0x40   :  { %3248 = vmatprep.subr.mxu1 %v4960_v54  ;;  %5035 = vst [vmem:[#allocation30_spill] sm:$0xff] %v4079_v28 }
  0x42   :  { %2985 = vmatpush3.xpose.msra.mxu0 %v3923_v35 }
  0x43   :  { %2986 = vmatprep.subr.mxu0 %v3925_v36  ;;  %3249 = vmatpush3.xpose.msra.mxu1 %v4031_v14 }
  0x44   :  { %3250 = vmatprep.subr.mxu1 %v4960_v54 }
  0x46   :  { %2987 = vmatpush3.xpose.msra.mxu0 %v3929_v37 }
  0x47   :  { %2988 = vmatprep.subr.mxu0 %v3931_v38  ;;  %3251 = vmatpush3.xpose.msra.mxu1 %v4035_v15 }
  0x48   :  { %3252 = vmatprep.subr.mxu1 %v4960_v54 }
  0x4a   :  { %2989 = vmatpush3.xpose.msra.mxu0 %v3935_v39 }
  0x4b   :  { %2990 = vmatprep.subr.mxu0 %v3937_v40  ;;  %3253 = vmatpush3.xpose.msra.mxu1 %v4039_v16 }
  0x4c   :  { %3254 = vmatprep.subr.mxu1 %v4960_v54 }
  0x4e   :  { %2991 = vmatpush3.xpose.msra.mxu0 %v3941_v41 }
  0x4f   :  { %2992 = vmatprep.subr.mxu0 %v3943_v42  ;;  %3255 = vmatpush3.xpose.msra.mxu1 %v4043_v17 }
  0x50   :  { %3256 = vmatprep.subr.mxu1 %v4960_v54 }
  0x52   :  { %2993 = vmatpush3.xpose.msra.mxu0 %v3947_v43 }
  0x53   :  { %2994 = vmatprep.subr.mxu0 %v3949_v44  ;;  %3257 = vmatpush3.xpose.msra.mxu1 %v4047_v18 }
  0x54   :  { %3258 = vmatprep.subr.mxu1 %v4960_v54 }
  0x56   :  { %2995 = vmatpush3.xpose.msra.mxu0 %v3953_v45 }
  0x57   :  { %2996 = vmatprep.subr.mxu0 %v3955_v46  ;;  %3259 = vmatpush3.xpose.msra.mxu1 %v4051_v19 }
  0x58   :  { %3260 = vmatprep.subr.mxu1 %v4960_v54 }
  0x5a   :  { %2997 = vmatpush3.xpose.msra.mxu0 %v3959_v47 }
  0x5b   :  { %2998 = vmatprep.subr.mxu0 %v3961_v48  ;;  %3261 = vmatpush3.xpose.msra.mxu1 %v4055_v20 }
  0x5c   :  { %3262 = vmatprep.subr.mxu1 %v4960_v54 }
  0x5e   :  { %2999 = vmatpush3.xpose.msra.mxu0 %v3965_v49 }
  0x5f   :  { %3000 = vmatprep.subr.mxu0 %v3967_v50  ;;  %3263 = vmatpush3.xpose.msra.mxu1 %v4059_v22 }
  0x60   :  { %3264 = vmatprep.subr.mxu1 %v4960_v54 }
  0x62   :  { %3001 = vmatpush3.xpose.msra.mxu0 %v3971_v51 }
  0x63   :  { %3002 = vmatprep.subr.mxu0 %v3973_v52  ;;  %3265 = vmatpush3.xpose.msra.mxu1 %v4063_v23 }
  0x64   :  { %3266 = vmatprep.subr.mxu1 %v4960_v54 }
  0x66   :  { %3003 = vmatpush3.xpose.msra.mxu0 %v3977_v53 }
  0x67   :  { %3277 = vmatprep.subr.mxu0 %v4960_v54  ;;  %3267 = vmatpush3.xpose.msra.mxu1 %v4067_v25 }
  0x68   :  { %3268 = vmatprep.subr.mxu1 %v4960_v54 }
  0x69   :  { %3005 = vmatmul.mubr.f32.vlgmr.msra.gmra.mxu0 %v3918_v34 }
  0x6a   :  { %3279 = vmatprep.mubr.msk.f32.mxu0 %vm3827_vm7, %v4960_v54 }
  0x6b   :  { %3269 = vmatpush3.xpose.msra.mxu1 %v4071_v26 }
  0x6c   :  { %3270 = vmatprep.subr.mxu1 %v4960_v54 }
  0x6f   :  { %3271 = vmatpush3.xpose.msra.mxu1 %v4075_v27 }
  0x70   :  { %3272 = vmatprep.subr.mxu1 %v4960_v54 }
  0x73   :  { %3273 = vmatpush3.xpose.msra.mxu1 %v4079_v28 }
  0x74   :  { %3292 = vmatprep.subr.mxu1 %v4960_v54 }
  0x76   :  { %3275 = vmatmul.mubr.f32.vlgmr.msra.gmra.mxu1 %v3918_v34  ;;  %v147_v34 = vsub.s32 2, %v3987_v56  ;;  %v4150_v56 = vld [vmem:[#allocation7] sm:$0xff] }
  0x77   :  { %3294 = vmatprep.mubr.msk.f32.mxu1 %vm3827_vm7, %v4960_v54 }
 0x129   :  { %v248_v61 = vpop.f32.mrf.mxu0 }
 0x12a   :  { %v4010_v10 = vadd.f32 %v248_v61, %v4000_v62 }
 0x12b   :  { %v250_v63 = vpop.f32.mrf.mxu0 }
 0x12c   :  { %v4003_v9 = vadd.f32 %v250_v63, %v3997_v60  ;;  %v1597_v60 = vld [vmem:[#allocation2 + $0xb] sm:$0x1] }
 0x12e   :  { %488 = vrot.lane.b32.xlu1 %v4003_v9, %s3828_s11  ;;  %3278 = vmatpush3.xpose.msk.msra.mxu0 %vm323_vm8, %v4003_v9 }
 0x12f   :  { %3282 = vmatprep.subr.mxu0 %v4960_v54 }
 0x131   :  { %3280 = vmatmul.mubr.msk.f32.vlgmr.msra.gmra.mxu0 %vm323_vm8, %v4010_v10 }
 0x132   :  { %486 = vrot.lane.b32.xlu1 %v4010_v10, %s3828_s11  ;;  %3284 = vmatprep.mubr.msk.f32.mxu0 %vm3827_vm7, %v4960_v54  ;;  %v4090_v54 = vrot.slane %v3993_v58, %v147_v34 }
 0x134   :  { %5036 = vst [vmem:[#allocation31_spill] sm:$0xff] %v4090_v54 }
 0x136   :  { %v319_v27 = vpop.f32.mrf.mxu1 }
 0x138   :  { %v3276_v26 = vpop.f32.mrf.mxu1 }
 0x1f1   :  { %v396_v29 = vpop.f32.mrf.mxu0 }
 0x1f2   :  { %v400_v31 = vmul.f32 0.17677669, %v396_v29  ;;  %v4093_v29 = vadd.f32 %v319_v27, %v4090_v54  ;;  %v4146_v54 = vld [vmem:[#allocation7 + $0x10] sm:$0xff] }
 0x1f3   :  { %v3281_v33 = vpop.f32.mrf.mxu0 }
 0x1f4   :  { %v402_v55 = vsel %vm401_vm9, %v400_v31, -inf  ;;  %3283 = vmatpush3.msra.mxu0 %v4093_v29  ;;  %v5037_v33 = vmov 0.0  }
 0x1f5   :  { %403 = vmax.xlane.f32.xlu0 %v402_v55  ;;  %3287 = vmatprep.subr.mxu0 %v5037_v33 }
 0x27e   :  { %v404_v57 = vpop.xlane.xlu0 %403 }
 0x27f   :  { %v405_v59 = vsub.f32 %v400_v31, %v404_v57  ;;  %v489_v57 = vpop.permute.xlu1 %488 }
 0x281   :  { %v406_v61 = vmul.f32 1.442695, %v405_v59 }
 0x283   :  { %3685 = vpow2.f32 %v406_v61  ;;  %v487_v58 = vpop.permute.xlu1 %486 }
 0x290   :  { %v3686_v63 = vpop.eup %3685 }
 0x291   :  { %v408_v28 = vsel %vm401_vm9, %v3686_v63, 0.0 }
 0x292   :  { %409 = vadd.xlane.f32.xlu0 %v408_v28 }
 0x31b   :  { %v410_v31 = vpop.xlane.xlu0 %409 }
 0x31c   :  { %3687 = vrcp.f32 %v410_v31  ;;  %v4110_v31 = vld [vmem:[#allocation7 + $0x78] sm:$0xff] }
 0x329   :  { %v3688_v55 = vpop.eup %3687 }
 0x32a   :  { %v412_v59 = vmul.f32 %v3688_v55, %v3686_v63  ;;  %v4114_v55 = vld [vmem:[#allocation7 + $0x70] sm:$0xff] }
 0x32c   :  { %3285 = vmatmul.mubr.msk.f32.vlgmr.msra.gmra.mxu0 %vm401_vm9, %v412_v59  ;;  %v4122_v59 = vld [vmem:[#allocation7 + $0x58] sm:$0xff] }
 0x32d   :  { %3288 = vmatpush3.xpose.msk.msra.mxu0 %vm323_vm8, %v489_v57  ;;  %3289 = vmatprep.mubr.msk.f32.mxu0 %vm3827_vm7, %v5037_v33  ;;  %v4118_v57 = vld [vmem:[#allocation7 + $0x68] sm:$0xff] }
 0x32e   :  { %3297 = vmatprep.subr.mxu0 %v5037_v33 }
 0x330   :  { %3290 = vmatmul.mubr.msk.f32.vlgmr.msra.gmra.mxu0 %vm323_vm8, %v487_v58  ;;  %v4126_v58 = vld [vmem:[#allocation7 + $0x50] sm:$0xff] }
 0x331   :  { %3329 = vmatprep.mubr.msk.f32.mxu0 %vm3827_vm7, %v5037_v33 }
 0x3ec   :  { %v4105_v26 = vpop.f32.mrf.mxu0 }
 0x3ee   :  { %v3286_v27 = vpop.f32.mrf.mxu0 }
 0x3ef   :  { %v4130_v27 = vld [vmem:[#allocation7 + $0x48] sm:$0xff] }
 0x3f0   :  { %v560_v28 = vpop.f32.mrf.mxu0  ;;  %5038 = vst [vmem:[#allocation32_spill] sm:$0xff] %v4130_v27 }
 0x3f1   :  { %v564_v61 = vmul.f32 0.17677669, %v560_v28  ;;  %v4134_v28 = vld [vmem:[#allocation7 + $0x40] sm:$0xff] }
 0x3f2   :  { %v3291_v63 = vpop.f32.mrf.mxu0 }
 0x3f3   :  { %v565_v34 = vsel %vm401_vm9, %v564_v61, -inf  ;;  %v4138_v63 = vld [vmem:[#allocation7 + $0x30] sm:$0xff] }
 0x3f4   :  { %566 = vmax.xlane.f32.xlu0 %v565_v34  ;;  %v4142_v34 = vld [vmem:[#allocation7 + $0x20] sm:$0xff] }
 0x40a   :  { %577 = vrot.lane.b32.xlu0 %v4093_v29, %s3828_s11 }
 0x40e   :  { %699 = vrot.lane.b32.xlu0 %v4110_v31, %s3828_s11 }
 0x412   :  { %697 = vrot.lane.b32.xlu0 %v4114_v55, %s3828_s11 }
 0x416   :  { %695 = vrot.lane.b32.xlu0 %v4118_v57, %s3828_s11 }
 0x41a   :  { %691 = vrot.lane.b32.xlu0 %v4122_v59, %s3828_s11 }
 0x41e   :  { %689 = vrot.lane.b32.xlu0 %v4126_v58, %s3828_s11 }
 0x422   :  { %687 = vrot.lane.b32.xlu0 %v4130_v27, %s3828_s11 }
 0x426   :  { %685 = vrot.lane.b32.xlu0 %v4134_v28, %s3828_s11 }
 0x42a   :  { %681 = vrot.lane.b32.xlu0 %v4138_v63, %s3828_s11 }
 0x42e   :  { %677 = vrot.lane.b32.xlu0 %v4142_v34, %s3828_s11 }
 0x432   :  { %673 = vrot.lane.b32.xlu0 %v4146_v54, %s3828_s11 }
 0x436   :  { %669 = vrot.lane.b32.xlu0 %v4150_v56, %s3828_s11 }
 0x43a   :  { %911 = vrot.lane.b32.xlu0 %v4010_v10, %s3829_s2 }
 0x47d   :  { %v567_v25 = vpop.xlane.xlu0 %566 }
 0x47e   :  { %v568_v23 = vsub.f32 %v564_v61, %v567_v25  ;;  %v4173_v25 = vld [vmem:[#allocation7 + $0x60] sm:$0xff]  ;;  %v4177_v61 = vld [vmem:[#allocation7 + $0x38] sm:$0xff] }
 0x47f   :  { %5042 = vst [vmem:[#allocation36_spill] sm:$0xff] %v4177_v61 }
 0x480   :  { %v569_v22 = vmul.f32 1.442695, %v568_v23 }
 0x481   :  { %v578_v20 = vpop.permute.xlu0 %577 }
 0x482   :  { %3689 = vpow2.f32 %v569_v22  ;;  %3293 = vmatpush3.msra.mxu1 %v578_v20 }
 0x483   :  { %3332 = vmatprep.subr.mxu1 %v5037_v33 }
 0x485   :  { %v4157_v19 = vpop.permute.xlu0 %699 }
 0x486   :  { %5039 = vst [vmem:[#allocation33_spill] sm:$0xff] %v4157_v19  ;;  %3298 = vmatpush3.xpose.msk.msra.mxu0 %vm323_vm8, %v4157_v19 }
 0x487   :  { %3299 = vmatprep.subr.mxu0 %v5037_v33 }
 0x489   :  { %v4162_v18 = vpop.permute.xlu0 %697 }
 0x48a   :  { %5040 = vst [vmem:[#allocation34_spill] sm:$0xff] %v4162_v18  ;;  %3300 = vmatpush3.xpose.msk.msra.mxu0 %vm323_vm8, %v4162_v18  ;;  %v4181_v18 = vld [vmem:[#allocation7 + $0x28] sm:$0xff] }
 0x48b   :  { %3301 = vmatprep.subr.mxu0 %v5037_v33  ;;  %5043 = vst [vmem:[#allocation37_spill] sm:$0xff] %v4181_v18 }
 0x48d   :  { %v4167_v23 = vpop.permute.xlu0 %695 }
 0x48e   :  { %5041 = vst [vmem:[#allocation35_spill] sm:$0xff] %v4167_v23  ;;  %3302 = vmatpush3.xpose.msk.msra.mxu0 %vm323_vm8, %v4167_v23  ;;  %v4185_v23 = vld [vmem:[#allocation7 + $0x18] sm:$0xff] }
 0x48f   :  { %v3690_v20 = vpop.eup %3689  ;;  %3303 = vmatprep.subr.mxu0 %v5037_v33  ;;  %5044 = vst [vmem:[#allocation38_spill] sm:$0xff] %v4185_v23 }
 0x490   :  { %v571_v22 = vsel %vm401_vm9, %v3690_v20, 0.0 }
 0x491   :  { %572 = vadd.xlane.f32.xlu1 %v571_v22  ;;  %v4189_v22 = vld [vmem:[#allocation7 + $0x8] sm:$0xff]  ;;  %v4195_v17 = vpop.permute.xlu0 %691 }
 0x492   :  { %5045 = vst [vmem:[#allocation39_spill] sm:$0xff] %v4189_v22  ;;  %5046 = vst [vmem:[#allocation40_spill] sm:$0xff] %v4195_v17 }
 0x495   :  { %v4202_v15 = vpop.permute.xlu0 %689 }
 0x496   :  { %5048 = vst [vmem:[#allocation42_spill] sm:$0xff] %v4202_v15 }
 0x499   :  { %v4209_v14 = vpop.permute.xlu0 %687 }
 0x49a   :  { %5049 = vst [vmem:[#allocation43_spill] sm:$0xff] %v4209_v14 }
 0x4a2   :  { %693 = vrot.lane.b32.xlu1 %v4173_v25, %s3828_s11 }
 0x4a6   :  { %683 = vrot.lane.b32.xlu1 %v4177_v61, %s3828_s11 }
 0x4aa   :  { %679 = vrot.lane.b32.xlu1 %v4181_v18, %s3828_s11 }
 0x4ae   :  { %675 = vrot.lane.b32.xlu1 %v4185_v23, %s3828_s11 }
 0x4b2   :  { %671 = vrot.lane.b32.xlu1 %v4189_v22, %s3828_s11 }
 0x4b6   :  { %913 = vrot.lane.b32.xlu1 %v4003_v9, %s3829_s2 }
 0x51a   :  { %v573_v19 = vpop.xlane.xlu1 %572 }
 0x51b   :  { %3691 = vrcp.f32 %v573_v19 }
 0x51e   :  { %v4197_v16 = vpop.permute.xlu1 %693 }
 0x51f   :  { %5047 = vst [vmem:[#allocation41_spill] sm:$0xff] %v4197_v16  ;;  %3304 = vmatpush3.xpose.msk.msra.mxu0 %vm323_vm8, %v4197_v16 }
 0x520   :  { %3305 = vmatprep.subr.mxu0 %v5037_v33 }
 0x523   :  { %3306 = vmatpush3.xpose.msk.msra.mxu0 %vm323_vm8, %v4195_v17 }
 0x524   :  { %3307 = vmatprep.subr.mxu0 %v5037_v33 }
 0x527   :  { %3308 = vmatpush3.xpose.msk.msra.mxu0 %vm323_vm8, %v4202_v15  ;;  %v4221_v15 = vpop.permute.xlu0 %685 }
 0x528   :  { %v3692_v19 = vpop.eup %3691  ;;  %3309 = vmatprep.subr.mxu0 %v5037_v33  ;;  %5050 = vst [vmem:[#allocation44_spill] sm:$0xff] %v4221_v15 }
 0x529   :  { %v575_v13 = vmul.f32 %v3692_v19, %v3690_v20 }
 0x52b   :  { %3295 = vmatmul.mubr.msk.f32.vlgmr.msra.gmra.mxu1 %vm401_vm9, %v575_v13  ;;  %3310 = vmatpush3.xpose.msk.msra.mxu0 %vm323_vm8, %v4209_v14  ;;  %v4229_v13 = vpop.permute.xlu1 %683  ;;  %v4237_v20 = vpop.permute.xlu0 %681 }
 0x52c   :  { %3333 = vmatpush3.xpose.msk.msra.mxu1 %vm323_vm8, %v4110_v31  ;;  %3364 = vmatprep.mubr.msk.f32.mxu1 %vm3827_vm7, %v5037_v33  ;;  %5051 = vst [vmem:[#allocation45_spill] sm:$0xff] %v4229_v13  ;;  %5052 = vst [vmem:[#allocation46_spill] sm:$0xff] %v4237_v20 }
 0x52d   :  { %3334 = vmatprep.subr.mxu1 %v5037_v33  ;;  %3311 = vmatprep.subr.mxu0 %v5037_v33 }
 0x52f   :  { %3312 = vmatpush3.xpose.msk.msra.mxu0 %vm323_vm8, %v4221_v15  ;;  %v4245_v19 = vpop.permute.xlu1 %679 }
 0x530   :  { %3335 = vmatpush3.xpose.msk.msra.mxu1 %vm323_vm8, %v4114_v55  ;;  %3313 = vmatprep.subr.mxu0 %v5037_v33  ;;  %5053 = vst [vmem:[#allocation47_spill] sm:$0xff] %v4245_v19 }
 0x531   :  { %3336 = vmatprep.subr.mxu1 %v5037_v33 }
 0x533   :  { %3314 = vmatpush3.xpose.msk.msra.mxu0 %vm323_vm8, %v4229_v13 }
 0x534   :  { %3337 = vmatpush3.xpose.msk.msra.mxu1 %vm323_vm8, %v4118_v57  ;;  %3315 = vmatprep.subr.mxu0 %v5037_v33 }
 0x535   :  { %3338 = vmatprep.subr.mxu1 %v5037_v33 }
 0x537   :  { %3316 = vmatpush3.xpose.msk.msra.mxu0 %vm323_vm8, %v4237_v20  ;;  %v4253_v20 = vpop.permute.xlu0 %677 }
 0x538   :  { %3339 = vmatpush3.xpose.msk.msra.mxu1 %vm323_vm8, %v4173_v25  ;;  %3317 = vmatprep.subr.mxu0 %v5037_v33  ;;  %5054 = vst [vmem:[#allocation48_spill] sm:$0xff] %v4253_v20 }
 0x539   :  { %3340 = vmatprep.subr.mxu1 %v5037_v33 }
 0x53b   :  { %3318 = vmatpush3.xpose.msk.msra.mxu0 %vm323_vm8, %v4245_v19  ;;  %v4261_v19 = vpop.permute.xlu1 %675 }
 0x53c   :  { %3341 = vmatpush3.xpose.msk.msra.mxu1 %vm323_vm8, %v4122_v59  ;;  %3319 = vmatprep.subr.mxu0 %v5037_v33  ;;  %5055 = vst [vmem:[#allocation49_spill] sm:$0xff] %v4261_v19 }
 0x53d   :  { %3342 = vmatprep.subr.mxu1 %v5037_v33 }
 0x53f   :  { %3320 = vmatpush3.xpose.msk.msra.mxu0 %vm323_vm8, %v4253_v20  ;;  %v4269_v20 = vpop.permute.xlu0 %673 }
 0x540   :  { %3343 = vmatpush3.xpose.msk.msra.mxu1 %vm323_vm8, %v4126_v58  ;;  %3321 = vmatprep.subr.mxu0 %v5037_v33  ;;  %5056 = vst [vmem:[#allocation50_spill] sm:$0xff] %v4269_v20 }
 0x541   :  { %3344 = vmatprep.subr.mxu1 %v5037_v33 }
 0x543   :  { %3322 = vmatpush3.xpose.msk.msra.mxu0 %vm323_vm8, %v4261_v19  ;;  %v4277_v19 = vpop.permute.xlu1 %671 }
 0x544   :  { %3345 = vmatpush3.xpose.msk.msra.mxu1 %vm323_vm8, %v4130_v27  ;;  %3323 = vmatprep.subr.mxu0 %v5037_v33  ;;  %5057 = vst [vmem:[#allocation51_spill] sm:$0xff] %v4277_v19 }
 0x545   :  { %3346 = vmatprep.subr.mxu1 %v5037_v33 }
 0x547   :  { %3324 = vmatpush3.xpose.msk.msra.mxu0 %vm323_vm8, %v4269_v20  ;;  %v4285_v20 = vpop.permute.xlu0 %669 }
 0x548   :  { %3347 = vmatpush3.xpose.msk.msra.mxu1 %vm323_vm8, %v4134_v28  ;;  %3325 = vmatprep.subr.mxu0 %v5037_v33  ;;  %5058 = vst [vmem:[#allocation52_spill] sm:$0xff] %v4285_v20 }
 0x549   :  { %3348 = vmatprep.subr.mxu1 %v5037_v33 }
 0x54b   :  { %3326 = vmatpush3.xpose.msk.msra.mxu0 %vm323_vm8, %v4277_v19  ;;  %v914_v19 = vpop.permute.xlu1 %913  ;;  %v912_v15 = vpop.permute.xlu0 %911 }
 0x54c   :  { %3349 = vmatpush3.xpose.msk.msra.mxu1 %vm323_vm8, %v4177_v61  ;;  %3327 = vmatprep.subr.mxu0 %v5037_v33 }
 0x54d   :  { %3350 = vmatprep.subr.mxu1 %v5037_v33 }
 0x54f   :  { %3328 = vmatpush3.xpose.msk.msra.mxu0 %vm323_vm8, %v4285_v20 }
 0x550   :  { %3351 = vmatpush3.xpose.msk.msra.mxu1 %vm323_vm8, %v4138_v63  ;;  %3367 = vmatprep.subr.mxu0 %v5037_v33 }
 0x551   :  { %3352 = vmatprep.subr.mxu1 %v5037_v33 }
 0x554   :  { %3353 = vmatpush3.xpose.msk.msra.mxu1 %vm323_vm8, %v4181_v18 }
 0x555   :  { %3354 = vmatprep.subr.mxu1 %v5037_v33 }
 0x558   :  { %3355 = vmatpush3.xpose.msk.msra.mxu1 %vm323_vm8, %v4142_v34 }
 0x559   :  { %3356 = vmatprep.subr.mxu1 %v5037_v33 }
 0x55c   :  { %3357 = vmatpush3.xpose.msk.msra.mxu1 %vm323_vm8, %v4185_v23 }
 0x55d   :  { %3358 = vmatprep.subr.mxu1 %v5037_v33 }
 0x560   :  { %3359 = vmatpush3.xpose.msk.msra.mxu1 %vm323_vm8, %v4146_v54 }
 0x561   :  { %3360 = vmatprep.subr.mxu1 %v5037_v33 }
 0x564   :  { %3361 = vmatpush3.xpose.msk.msra.mxu1 %vm323_vm8, %v4189_v22 }
 0x565   :  { %3362 = vmatprep.subr.mxu1 %v5037_v33 }
 0x568   :  { %3363 = vmatpush3.xpose.msk.msra.mxu1 %vm323_vm8, %v4150_v56 }
 0x569   :  { %3372 = vmatprep.subr.mxu1 %v5037_v33 }
 0x56b   :  { %3365 = vmatmul.mubr.msk.f32.vlgmr.msra.gmra.mxu1 %vm323_vm8, %v4105_v26 }
 0x56c   :  { %3374 = vmatprep.mubr.msk.f32.mxu1 %vm3827_vm7, %v5037_v33 }
 0x5eb   :  { %v649_v20 = vpop.f32.mrf.mxu1 }
 0x5ec   :  { %3330 = vmatmul.mubr.msk.f32.vlgmr.msra.gmra.mxu0 %vm323_vm8, %v649_v20 }
 0x5ed   :  { %3368 = vmatpush3.xpose.msk.msra.mxu0 %vm323_vm8, %v914_v19  ;;  %v3296_v13 = vpop.f32.mrf.mxu1  ;;  %3369 = vmatprep.mubr.msk.f32.mxu0 %vm3827_vm7, %v5037_v33 }
 0x5ee   :  { %3377 = vmatprep.subr.mxu0 %v5037_v33 }
 0x5f0   :  { %3370 = vmatmul.mubr.msk.f32.vlgmr.msra.gmra.mxu0 %vm323_vm8, %v912_v15 }
 0x5f1   :  { %3409 = vmatprep.mubr.msk.f32.mxu0 %vm3827_vm7, %v5037_v33 }
 0x62b   :  { %v4323_v26 = vpop.f32.mrf.mxu1 }
 0x62c   :  { %5059 = vst [vmem:[#allocation53_spill] sm:$0xff] %v4323_v26 }
 0x62d   :  { %v3366_v14 = vpop.f32.mrf.mxu1 }
 0x6ac   :  { %v4325_v17 = vpop.f32.mrf.mxu0 }
 0x6ae   :  { %v3331_v20 = vpop.f32.mrf.mxu0 }
 0x6b0   :  { %v985_v16 = vpop.f32.mrf.mxu0 }
 0x6b1   :  { %v989_v19 = vmul.f32 0.17677669, %v985_v16 }
 0x6b2   :  { %v3371_v13 = vpop.f32.mrf.mxu0 }
 0x6b3   :  { %v990_v12 = vsel %vm401_vm9, %v989_v19, -inf }
 0x6b4   :  { %991 = vmax.xlane.f32.xlu1 %v990_v12 }
 0x6c5   :  { %1217 = vrot.lane.b32.xlu1 %v4003_v9, %s3823_s28 }
 0x6c9   :  { %1215 = vrot.lane.b32.xlu1 %v4010_v10, %s3823_s28 }
 0x6cd   :  { %1105 = vrot.lane.b32.xlu1 %v4114_v55, %s3829_s2 }
 0x6d1   :  { %1101 = vrot.lane.b32.xlu1 %v4173_v25, %s3829_s2 }
 0x6d5   :  { %1097 = vrot.lane.b32.xlu1 %v4126_v58, %s3829_s2 }
 0x6d9   :  { %1093 = vrot.lane.b32.xlu1 %v4134_v28, %s3829_s2 }
 0x6dd   :  { %1089 = vrot.lane.b32.xlu1 %v4138_v63, %s3829_s2 }
 0x6e1   :  { %1085 = vrot.lane.b32.xlu1 %v4142_v34, %s3829_s2 }
 0x6e5   :  { %1081 = vrot.lane.b32.xlu1 %v4146_v54, %s3829_s2 }
 0x6e9   :  { %1077 = vrot.lane.b32.xlu1 %v4150_v56, %s3829_s2 }
 0x73d   :  { %v992_v9 = vpop.xlane.xlu1 %991 }
 0x73e   :  { %v993_v10 = vsub.f32 %v989_v19, %v992_v9 }
 0x740   :  { %v994_v12 = vmul.f32 1.442695, %v993_v10 }
 0x741   :  { %v1218_v16 = vpop.permute.xlu1 %1217 }
 0x742   :  { %3693 = vpow2.f32 %v994_v12 }
 0x745   :  { %v1216_v13 = vpop.permute.xlu1 %1215 }
 0x749   :  { %v4373_v10 = vpop.permute.xlu1 %1105 }
 0x74a   :  { %5061 = vst [vmem:[#allocation55_spill] sm:$0xff] %v4373_v10 }
 0x74f   :  { %v3694_v14 = vpop.eup %3693 }
 0x750   :  { %v996_v15 = vsel %vm401_vm9, %v3694_v14, 0.0 }
 0x751   :  { %997 = vadd.xlane.f32.xlu0 %v996_v15 }
 0x767   :  { %1001 = vrot.lane.b32.xlu0 %v4093_v29, %s3829_s2 }
 0x76b   :  { %1107 = vrot.lane.b32.xlu0 %v4110_v31, %s3829_s2 }
 0x76f   :  { %1103 = vrot.lane.b32.xlu0 %v4118_v57, %s3829_s2 }
 0x773   :  { %1099 = vrot.lane.b32.xlu0 %v4122_v59, %s3829_s2 }
 0x777   :  { %1095 = vrot.lane.b32.xlu0 %v4130_v27, %s3829_s2 }
 0x77b   :  { %1091 = vrot.lane.b32.xlu0 %v4177_v61, %s3829_s2  ;;  %v1599_v61 = vld [vmem:[#allocation2 + $0xf] sm:$0x1] }
 0x77c   :  { %v1620_v26 = vrot.slane %v1599_v61, 1 }
 0x77f   :  { %1087 = vrot.lane.b32.xlu0 %v4181_v18, %s3829_s2  ;;  %v1598_v18 = vld [vmem:[#allocation2 + $0xd] sm:$0x1] }
 0x780   :  { %v1618_v27 = vrot.slane %v1598_v18, 2 }
 0x783   :  { %1083 = vrot.lane.b32.xlu0 %v4185_v23, %s3829_s2 }
 0x787   :  { %1079 = vrot.lane.b32.xlu0 %v4189_v22, %s3829_s2  ;;  %v1614_v22 = vrot.slane %v1596_v11, 4 }
 0x7da   :  { %v998_v20 = vpop.xlane.xlu0 %997 }
 0x7db   :  { %3695 = vrcp.f32 %v998_v20 }
 0x7de   :  { %v1002_v19 = vpop.permute.xlu0 %1001 }
 0x7df   :  { %3373 = vmatpush3.msra.mxu1 %v1002_v19  ;;  %v4386_v19 = vpop.permute.xlu1 %1101 }
 0x7e0   :  { %3412 = vmatprep.subr.mxu1 %v5037_v33  ;;  %5063 = vst [vmem:[#allocation57_spill] sm:$0xff] %v4386_v19 }
 0x7e2   :  { %v4368_v9 = vpop.permute.xlu0 %1107 }
 0x7e3   :  { %5060 = vst [vmem:[#allocation54_spill] sm:$0xff] %v4368_v9  ;;  %3378 = vmatpush3.xpose.msk.msra.mxu0 %vm323_vm8, %v4368_v9 }
 0x7e4   :  { %3379 = vmatprep.subr.mxu0 %v5037_v33 }
 0x7e6   :  { %v4377_v15 = vpop.permute.xlu0 %1103 }
 0x7e7   :  { %3380 = vmatpush3.xpose.msk.msra.mxu0 %vm323_vm8, %v4373_v10  ;;  %5062 = vst [vmem:[#allocation56_spill] sm:$0xff] %v4377_v15 }
 0x7e8   :  { %v3696_v12 = vpop.eup %3695  ;;  %3381 = vmatprep.subr.mxu0 %v5037_v33 }
 0x7e9   :  { %v1000_v20 = vmul.f32 %v3696_v12, %v3694_v14 }
 0x7ea   :  { %v4393_v14 = vpop.permute.xlu0 %1099 }
 0x7eb   :  { %3375 = vmatmul.mubr.msk.f32.vlgmr.msra.gmra.mxu1 %vm401_vm9, %v1000_v20  ;;  %3382 = vmatpush3.xpose.msk.msra.mxu0 %vm323_vm8, %v4377_v15  ;;  %5064 = vst [vmem:[#allocation58_spill] sm:$0xff] %v4393_v14  ;;  %v1595_v15 = vld [vmem:[#allocation2 + $0x7] sm:$0x1] }
 0x7ec   :  { %3413 = vmatpush3.xpose.msk.msra.mxu1 %vm323_vm8, %v1218_v16  ;;  %3414 = vmatprep.mubr.msk.f32.mxu1 %vm3827_vm7, %v5037_v33  ;;  %v4401_v16 = vpop.permute.xlu1 %1097  ;;  %v1612_v62 = vrot.slane %v1595_v15, 5 }
 0x7ed   :  { %3383 = vmatprep.subr.mxu0 %v5037_v33  ;;  %3417 = vmatprep.subr.mxu1 %v5037_v33  ;;  %5065 = vst [vmem:[#allocation59_spill] sm:$0xff] %v4401_v16 }
 0x7ef   :  { %3415 = vmatmul.mubr.msk.f32.vlgmr.msra.gmra.mxu1 %vm323_vm8, %v1216_v13  ;;  %3384 = vmatpush3.xpose.msk.msra.mxu0 %vm323_vm8, %v4386_v19  ;;  %v4405_v13 = vpop.permute.xlu0 %1095 }
 0x7f0   :  { %3385 = vmatprep.subr.mxu0 %v5037_v33  ;;  %3419 = vmatprep.mubr.msk.f32.mxu1 %vm3827_vm7, %v5037_v33  ;;  %5066 = vst [vmem:[#allocation60_spill] sm:$0xff] %v4405_v13  ;;  %v4411_v12 = vpop.permute.xlu1 %1093 }
 0x7f1   :  { %5067 = vst [vmem:[#allocation61_spill] sm:$0xff] %v4411_v12 }
 0x7f3   :  { %3386 = vmatpush3.xpose.msk.msra.mxu0 %vm323_vm8, %v4393_v14  ;;  %v4415_v20 = vpop.permute.xlu0 %1091  ;;  %v1594_v14 = vld [vmem:[#allocation2 + $0x5] sm:$0x1] }
 0x7f4   :  { %3387 = vmatprep.subr.mxu0 %v5037_v33  ;;  %5068 = vst [vmem:[#allocation62_spill] sm:$0xff] %v4415_v20  ;;  %v1610_v10 = vrot.slane %v1594_v14, 6 }
 0x7f7   :  { %3388 = vmatpush3.xpose.msk.msra.mxu0 %vm323_vm8, %v4401_v16  ;;  %v4421_v16 = vpop.permute.xlu1 %1089 }
 0x7f8   :  { %3389 = vmatprep.subr.mxu0 %v5037_v33  ;;  %5069 = vst [vmem:[#allocation63_spill] sm:$0xff] %v4421_v16 }
 0x7fb   :  { %3390 = vmatpush3.xpose.msk.msra.mxu0 %vm323_vm8, %v4405_v13  ;;  %v4425_v13 = vpop.permute.xlu0 %1087 }
 0x7fc   :  { %3391 = vmatprep.subr.mxu0 %v5037_v33  ;;  %5070 = vst [vmem:[#allocation64_spill] sm:$0xff] %v4425_v13 }
 0x7ff   :  { %3392 = vmatpush3.xpose.msk.msra.mxu0 %vm323_vm8, %v4411_v12  ;;  %v4431_v12 = vpop.permute.xlu1 %1085 }
 0x800   :  { %3393 = vmatprep.subr.mxu0 %v5037_v33  ;;  %5071 = vst [vmem:[#allocation65_spill] sm:$0xff] %v4431_v12 }
 0x803   :  { %3394 = vmatpush3.xpose.msk.msra.mxu0 %vm323_vm8, %v4415_v20  ;;  %v4435_v20 = vpop.permute.xlu0 %1083 }
 0x804   :  { %3395 = vmatprep.subr.mxu0 %v5037_v33  ;;  %5072 = vst [vmem:[#allocation66_spill] sm:$0xff] %v4435_v20 }
 0x807   :  { %3396 = vmatpush3.xpose.msk.msra.mxu0 %vm323_vm8, %v4421_v16  ;;  %v4441_v16 = vpop.permute.xlu1 %1081 }
 0x808   :  { %3397 = vmatprep.subr.mxu0 %v5037_v33  ;;  %5073 = vst [vmem:[#allocation67_spill] sm:$0xff] %v4441_v16 }
 0x80b   :  { %3398 = vmatpush3.xpose.msk.msra.mxu0 %vm323_vm8, %v4425_v13  ;;  %v4445_v13 = vpop.permute.xlu0 %1079 }
 0x80c   :  { %3399 = vmatprep.subr.mxu0 %v5037_v33  ;;  %5074 = vst [vmem:[#allocation68_spill] sm:$0xff] %v4445_v13 }
 0x80f   :  { %3400 = vmatpush3.xpose.msk.msra.mxu0 %vm323_vm8, %v4431_v12  ;;  %v4451_v12 = vpop.permute.xlu1 %1077 }
 0x810   :  { %3401 = vmatprep.subr.mxu0 %v5037_v33  ;;  %5075 = vst [vmem:[#allocation69_spill] sm:$0xff] %v4451_v12 }
 0x813   :  { %3402 = vmatpush3.xpose.msk.msra.mxu0 %vm323_vm8, %v4435_v20  ;;  %v1593_v20 = vld [vmem:[#allocation2 + $0x3] sm:$0x1] }
 0x814   :  { %3403 = vmatprep.subr.mxu0 %v5037_v33  ;;  %v1608_v19 = vrot.slane %v1593_v20, 7 }
 0x817   :  { %3404 = vmatpush3.xpose.msk.msra.mxu0 %vm323_vm8, %v4441_v16  ;;  %v1592_v16 = vld [vmem:[#allocation2 + $0x1] sm:$0x1] }
 0x818   :  { %3405 = vmatprep.subr.mxu0 %v5037_v33  ;;  %v1609_v9 = vsel %vm161_vm0, %v1608_v19, %v1592_v16  ;;  %v5087_v16 = vld [vmem:[#allocation18_spill] sm:$0xff] }
 0x81b   :  { %3406 = vmatpush3.xpose.msk.msra.mxu0 %vm323_vm8, %v4445_v13  ;;  %v1611_v13 = vsel %vm164_vm1, %v1610_v10, %v1609_v9  ;;  %v5085_v9 = vld [vmem:[#allocation16_spill] sm:$0xff]  ;;  %v5086_v10 = vld [vmem:[#allocation17_spill] sm:$0xff] }
 0x81c   :  { %3407 = vmatprep.subr.mxu0 %v5037_v33  ;;  %v1613_v23 = vsel %vm167_vm2, %v1612_v62, %v1611_v13  ;;  %v5088_v13 = vld [vmem:[#allocation19_spill] sm:$0xff] }
 0x81f   :  { %3408 = vmatpush3.xpose.msk.msra.mxu0 %vm323_vm8, %v4451_v12  ;;  %v1616_v12 = vrot.slane %v1597_v60, 3 }
 0x820   :  { %3107 = vmatprep.subr.mxu0 %v3874_v0  ;;  %v1615_v0 = vsel %vm170_vm3, %v1614_v22, %v1613_v23  ;;  %v5084_v22 = vld [vmem:[#allocation15_spill] sm:$0xff] }
 0x821   :  { %v1617_v20 = vsel %vm173_vm4, %v1616_v12, %v1615_v0  ;;  %v5089_v12 = vld [vmem:[#allocation20_spill] sm:$0xff]  ;;  %v5090_v0 = vld [vmem:[#allocation21_spill] sm:$0xff] }
 0x822   :  { %v1619_v14 = vsel %vm176_vm5, %v1618_v27, %v1617_v20  ;;  %v5091_v20 = vld [vmem:[#allocation22_spill] sm:$0xff] }
 0x823   :  { %v4463_v19 = vsel %vm179_vm6, %v1620_v26, %v1619_v14  ;;  %v5092_v14 = vld [vmem:[#allocation23_spill] sm:$0xff] }
 0x8ab   :  { %v1073_v15 = vpop.f32.mrf.mxu1 }
 0x8ac   :  { %3410 = vmatmul.mubr.msk.f32.vlgmr.msra.gmra.mxu0 %vm323_vm8, %v1073_v15  ;;  %v5093_v15 = vld [vmem:[#allocation24_spill] sm:$0xff] }
 0x8ad   :  { %3108 = vmatpush3.xpose.msra.mxu0 %v3876_v1  ;;  %v3376_v62 = vpop.f32.mrf.mxu1  ;;  %3139 = vmatprep.mubr.f32.mxu0 %v4463_v19 }
 0x8ae   :  { %3109 = vmatprep.subr.mxu0 %v3878_v2  ;;  %v5094_v62 = vld [vmem:[#allocation25_spill] sm:$0xff] }
 0x8af   :  { %v1289_v60 = vpop.f32.mrf.mxu1 }
 0x8b0   :  { %v1293_v11 = vmul.f32 0.17677669, %v1289_v60  ;;  %v5095_v60 = vld [vmem:[#allocation26_spill] sm:$0xff] }
 0x8b1   :  { %3110 = vmatpush3.xpose.msra.mxu0 %v3883_v3  ;;  %v3416_v18 = vpop.f32.mrf.mxu1 }
 0x8b2   :  { %v1294_v27 = vsel %vm401_vm9, %v1293_v11, -inf  ;;  %3111 = vmatprep.subr.mxu0 %v3885_v4  ;;  %v5097_v18 = vld [vmem:[#allocation28_spill] sm:$0xff] }
 0x8b3   :  { %1295 = vmax.xlane.f32.xlu0 %v1294_v27  ;;  %v5098_v27 = vld [vmem:[#allocation29_spill] sm:$0xff] }
 0x8b5   :  { %3112 = vmatpush3.xpose.msra.mxu0 %v3889_v5 }
 0x8b6   :  { %3113 = vmatprep.subr.mxu0 %v3891_v6 }
 0x8b9   :  { %3114 = vmatpush3.xpose.msra.mxu0 %v3894_v7  ;;  %v5076_v7 = vld [vmem:[#allocation53_spill] sm:$0xff] }
 0x8ba   :  { %3115 = vmatprep.subr.mxu0 %v3896_v8  ;;  %v908_v8 = vadd.f32 %v5076_v7, %v4325_v17  ;;  %v3830_v7 = vmov 1966171168  }
 0x8bd   :  { %3116 = vmatpush3.xpose.msra.mxu0 %v3901_v21 }
 0x8be   :  { %3117 = vmatprep.subr.mxu0 %v3904_v24 }
 0x8c1   :  { %3118 = vmatpush3.xpose.msra.mxu0 %v3911_v30  ;;  %v5077_v30 = vld [vmem:[#allocation32_spill] sm:$0xff] }
 0x8c2   :  { %3119 = vmatprep.subr.mxu0 %v3914_v32 }
 0x8c5   :  { %3120 = vmatpush3.xpose.msra.mxu0 %v3923_v35  ;;  %v5078_v35 = vld [vmem:[#allocation36_spill] sm:$0xff] }
 0x8c6   :  { %3121 = vmatprep.subr.mxu0 %v3925_v36  ;;  %v5079_v36 = vld [vmem:[#allocation37_spill] sm:$0xff] }
 0x8c9   :  { %3122 = vmatpush3.xpose.msra.mxu0 %v3929_v37  ;;  %1305 = vrot.lane.b32.xlu0 %v4093_v29, %s3823_s28  ;;  %v5080_v37 = vld [vmem:[#allocation38_spill] sm:$0xff] }
 0x8ca   :  { %3123 = vmatprep.subr.mxu0 %v3931_v38  ;;  %v5081_v38 = vld [vmem:[#allocation39_spill] sm:$0xff] }
 0x8cd   :  { %3124 = vmatpush3.xpose.msra.mxu0 %v3935_v39  ;;  %1409 = vrot.lane.b32.xlu0 %v4114_v55, %s3823_s28 }
 0x8ce   :  { %3125 = vmatprep.subr.mxu0 %v3937_v40 }
 0x8d1   :  { %3126 = vmatpush3.xpose.msra.mxu0 %v3941_v41  ;;  %1405 = vrot.lane.b32.xlu0 %v4173_v25, %s3823_s28  ;;  %v5082_v41 = vld [vmem:[#allocation13_spill] sm:$0xff] }
 0x8d2   :  { %3127 = vmatprep.subr.mxu0 %v3943_v42 }
 0x8d5   :  { %3128 = vmatpush3.xpose.msra.mxu0 %v3947_v43  ;;  %1401 = vrot.lane.b32.xlu0 %v4126_v58, %s3823_s28  ;;  %v5083_v43 = vld [vmem:[#allocation14_spill] sm:$0xff] }
 0x8d6   :  { %3129 = vmatprep.subr.mxu0 %v3949_v44 }
 0x8d9   :  { %3130 = vmatpush3.xpose.msra.mxu0 %v3953_v45  ;;  %1397 = vrot.lane.b32.xlu0 %v4134_v28, %s3823_s28 }
 0x8da   :  { %3131 = vmatprep.subr.mxu0 %v3955_v46 }
 0x8dd   :  { %3132 = vmatpush3.xpose.msra.mxu0 %v3959_v47  ;;  %1393 = vrot.lane.b32.xlu0 %v4138_v63, %s3823_s28 }
 0x8de   :  { %3133 = vmatprep.subr.mxu0 %v3961_v48 }
 0x8e1   :  { %3134 = vmatpush3.xpose.msra.mxu0 %v3965_v49  ;;  %1389 = vrot.lane.b32.xlu0 %v4142_v34, %s3823_s28 }
 0x8e2   :  { %3135 = vmatprep.subr.mxu0 %v3967_v50 }
 0x8e5   :  { %3136 = vmatpush3.xpose.msra.mxu0 %v3971_v51  ;;  %1385 = vrot.lane.b32.xlu0 %v4146_v54, %s3823_s28 }
 0x8e6   :  { %3137 = vmatprep.subr.mxu0 %v3973_v52 }
 0x8e9   :  { %3138 = vmatpush3.xpose.msra.mxu0 %v3977_v53  ;;  %1381 = vrot.lane.b32.xlu0 %v4150_v56, %s3823_s28 }
 0x8ea   :  { %3492 = vmatprep.subr.mxu0 %v5037_v33 }
 0x8ec   :  { %3140 = vmatmul.mubr.f32.vlgmr.msra.gmra.mxu0 %v4463_v19 }
 0x8ed   :  { %3494 = vmatprep.mubr.msk.f32.mxu0 %vm3827_vm7, %v5037_v33 }
 0x93c   :  { %v1296_v1 = vpop.xlane.xlu0 %1295 }
 0x93d   :  { %v1297_v2 = vsub.f32 %v1293_v11, %v1296_v1  ;;  %v5096_v11 = vld [vmem:[#allocation27_spill] sm:$0xff]  ;;  %v5099_v1 = vld [vmem:[#allocation30_spill] sm:$0xff] }
 0x93f   :  { %v1298_v3 = vmul.f32 1.442695, %v1297_v2 }
 0x940   :  { %v1306_v4 = vpop.permute.xlu0 %1305 }
 0x941   :  { %3697 = vpow2.f32 %v1298_v3  ;;  %3418 = vmatpush3.msra.mxu1 %v1306_v4 }
 0x942   :  { %3422 = vmatprep.subr.mxu1 %v5037_v33 }
 0x944   :  { %v4563_v49 = vpop.permute.xlu0 %1409 }
 0x948   :  { %v4574_v51 = vpop.permute.xlu0 %1405 }
 0x94c   :  { %v4583_v53 = vpop.permute.xlu0 %1401 }
 0x94e   :  { %v3698_v5 = vpop.eup %3697 }
 0x94f   :  { %v1300_v6 = vsel %vm401_vm9, %v3698_v5, 0.0 }
 0x950   :  { %1301 = vadd.xlane.f32.xlu1 %v1300_v6  ;;  %v4593_v56 = vpop.permute.xlu0 %1397 }
 0x954   :  { %v4603_v29 = vpop.permute.xlu0 %1393 }
 0x958   :  { %v4613_v55 = vpop.permute.xlu0 %1389 }
 0x961   :  { %1411 = vrot.lane.b32.xlu1 %v4110_v31, %s3823_s28 }
 0x965   :  { %1407 = vrot.lane.b32.xlu1 %v4118_v57, %s3823_s28 }
 0x969   :  { %1403 = vrot.lane.b32.xlu1 %v4122_v59, %s3823_s28  ;;  %v4623_v59 = vpop.permute.xlu0 %1385 }
 0x96c   :  { %v1210_v21 = vpop.f32.mrf.mxu0 }
 0x96d   :  { %v4531_v24 = vadd.f32 %v1210_v21, %v908_v8  ;;  %1399 = vrot.lane.b32.xlu1 %v5077_v30, %s3823_s28  ;;  %v4633_v28 = vpop.permute.xlu0 %1381  ;;  %v1529_v8 = vunpack.c.l.s4 %v3830_v7  ;;  %v5115_v7 = vld [vmem:[#allocation50_spill] sm:$0xff] }
 0x96e   :  { %v3411_v32 = vpop.f32.mrf.mxu0 }
 0x96f   :  { %v1530_v21 = vunpack.c.0.s8 %v1529_v8  ;;  %v5100_v32 = vld [vmem:[#allocation12_spill] sm:$0xff]  ;;  %v5116_v8 = vld [vmem:[#allocation51_spill] sm:$0xff] }
 0x971   :  { %1395 = vrot.lane.b32.xlu1 %v5078_v35, %s3823_s28  ;;  %v4689_v35 = vsub.s32 %v1530_v21, %v5100_v32  ;;  %v5117_v21 = vld [vmem:[#allocation52_spill] sm:$0xff] }
 0x975   :  { %1391 = vrot.lane.b32.xlu1 %v5079_v36, %s3823_s28 }
 0x979   :  { %1387 = vrot.lane.b32.xlu1 %v5080_v37, %s3823_s28 }
 0x97d   :  { %1383 = vrot.lane.b32.xlu1 %v5081_v38, %s3823_s28 }
 0x9ac   :  { %v1689_v39 = vpop.f32.mrf.mxu0 }
 0x9ad   :  { %v4549_v44 = vadd.f32 %v1689_v39, %v5083_v43 }
 0x9ae   :  { %v1691_v40 = vpop.f32.mrf.mxu0 }
 0x9af   :  { %v4544_v42 = vadd.f32 %v1691_v40, %v5082_v41 }
 0x9b1   :  { %3493 = vmatpush3.xpose.msk.msra.mxu0 %vm323_vm8, %v4544_v42 }
 0x9b2   :  { %3497 = vmatprep.subr.mxu0 %v5037_v33 }
 0x9b4   :  { %3495 = vmatmul.mubr.msk.f32.vlgmr.msra.gmra.mxu0 %vm323_vm8, %v4549_v44 }
 0x9b5   :  { %3499 = vmatprep.mubr.msk.f32.mxu0 %vm3827_vm7, %v5037_v33 }
 0x9d9   :  { %v1302_v45 = vpop.xlane.xlu1 %1301 }
 0x9da   :  { %3699 = vrcp.f32 %v1302_v45 }
 0x9dd   :  { %v4556_v48 = vpop.permute.xlu1 %1411 }
 0x9e1   :  { %v4569_v50 = vpop.permute.xlu1 %1407 }
 0x9e5   :  { %v4579_v52 = vpop.permute.xlu1 %1403 }
 0x9e7   :  { %v3700_v46 = vpop.eup %3699 }
 0x9e8   :  { %v1304_v47 = vmul.f32 %v3700_v46, %v3698_v5 }
 0x9e9   :  { %v4589_v54 = vpop.permute.xlu1 %1399 }
 0x9ea   :  { %3420 = vmatmul.mubr.msk.f32.vlgmr.msra.gmra.mxu1 %vm401_vm9, %v1304_v47 }
 0x9eb   :  { %3423 = vmatpush3.xpose.msk.msra.mxu1 %vm323_vm8, %v4556_v48  ;;  %3454 = vmatprep.mubr.msk.f32.mxu1 %vm3827_vm7, %v5037_v33 }
 0x9ec   :  { %3424 = vmatprep.subr.mxu1 %v5037_v33 }
 0x9ed   :  { %v4599_v17 = vpop.permute.xlu1 %1395 }
 0x9ef   :  { %3425 = vmatpush3.xpose.msk.msra.mxu1 %vm323_vm8, %v4563_v49 }
 0x9f0   :  { %3426 = vmatprep.subr.mxu1 %v5037_v33 }
 0x9f1   :  { %v4609_v31 = vpop.permute.xlu1 %1391 }
 0x9f3   :  { %3427 = vmatpush3.xpose.msk.msra.mxu1 %vm323_vm8, %v4569_v50 }
 0x9f4   :  { %3428 = vmatprep.subr.mxu1 %v5037_v33 }
 0x9f5   :  { %v4619_v57 = vpop.permute.xlu1 %1387 }
 0x9f7   :  { %3429 = vmatpush3.xpose.msk.msra.mxu1 %vm323_vm8, %v4574_v51 }
 0x9f8   :  { %3430 = vmatprep.subr.mxu1 %v5037_v33 }
 0x9f9   :  { %v4629_v58 = vpop.permute.xlu1 %1383 }
 0x9fb   :  { %3431 = vmatpush3.xpose.msk.msra.mxu1 %vm323_vm8, %v4579_v52 }
 0x9fc   :  { %3432 = vmatprep.subr.mxu1 %v5037_v33 }
 0x9ff   :  { %3433 = vmatpush3.xpose.msk.msra.mxu1 %vm323_vm8, %v4583_v53 }
 0xa00   :  { %3434 = vmatprep.subr.mxu1 %v5037_v33 }
 0xa03   :  { %3435 = vmatpush3.xpose.msk.msra.mxu1 %vm323_vm8, %v4589_v54 }
 0xa04   :  { %3436 = vmatprep.subr.mxu1 %v5037_v33 }
 0xa07   :  { %3437 = vmatpush3.xpose.msk.msra.mxu1 %vm323_vm8, %v4593_v56 }
 0xa08   :  { %3438 = vmatprep.subr.mxu1 %v5037_v33 }
 0xa0b   :  { %3439 = vmatpush3.xpose.msk.msra.mxu1 %vm323_vm8, %v4599_v17 }
 0xa0c   :  { %3440 = vmatprep.subr.mxu1 %v5037_v33 }
 0xa0f   :  { %3441 = vmatpush3.xpose.msk.msra.mxu1 %vm323_vm8, %v4603_v29 }
 0xa10   :  { %3442 = vmatprep.subr.mxu1 %v5037_v33 }
 0xa13   :  { %3443 = vmatpush3.xpose.msk.msra.mxu1 %vm323_vm8, %v4609_v31 }
 0xa14   :  { %3444 = vmatprep.subr.mxu1 %v5037_v33 }
 0xa17   :  { %3445 = vmatpush3.xpose.msk.msra.mxu1 %vm323_vm8, %v4613_v55 }
 0xa18   :  { %3446 = vmatprep.subr.mxu1 %v5037_v33 }
 0xa1b   :  { %3447 = vmatpush3.xpose.msk.msra.mxu1 %vm323_vm8, %v4619_v57 }
 0xa1c   :  { %3448 = vmatprep.subr.mxu1 %v5037_v33 }
 0xa1f   :  { %3449 = vmatpush3.xpose.msk.msra.mxu1 %vm323_vm8, %v4623_v59 }
 0xa20   :  { %3450 = vmatprep.subr.mxu1 %v5037_v33 }
 0xa23   :  { %3451 = vmatpush3.xpose.msk.msra.mxu1 %vm323_vm8, %v4629_v58 }
 0xa24   :  { %3452 = vmatprep.subr.mxu1 %v5037_v33 }
 0xa27   :  { %3453 = vmatpush3.xpose.msk.msra.mxu1 %vm323_vm8, %v4633_v28 }
 0xa28   :  { %3457 = vmatprep.subr.mxu1 %v5037_v33 }
 0xa74   :  { %v1836_v63 = vpop.f32.mrf.mxu0 }
 0xa75   :  { %v1840_v34 = vmul.f32 0.17677669, %v1836_v63 }
 0xa76   :  { %v3496_v23 = vpop.f32.mrf.mxu0 }
 0xa77   :  { %v1841_v25 = vsel %vm401_vm9, %v1840_v34, -inf }
 0xa78   :  { %1842 = vmax.xlane.f32.xlu1 %v1841_v25 }
 0xa89   :  { %1925 = vrot.lane.b32.xlu1 %v4549_v44, %s3828_s11 }
 0xaaa   :  { %v1377_v61 = vpop.f32.mrf.mxu1 }
 0xaab   :  { %3455 = vmatmul.mubr.msk.f32.vlgmr.msra.gmra.mxu1 %vm323_vm8, %v1377_v61 }
 0xaac   :  { %3458 = vmatpush3.xpose.msra.mxu1 %v5084_v22  ;;  %v3421_v26 = vpop.f32.mrf.mxu1  ;;  %3489 = vmatprep.mubr.msk.f32.mxu1 %vm3827_vm7, %v5037_v33 }
 0xaad   :  { %3459 = vmatprep.subr.mxu1 %v5037_v33 }
 0xab0   :  { %3460 = vmatpush3.xpose.msra.mxu1 %v5085_v9 }
 0xab1   :  { %3461 = vmatprep.subr.mxu1 %v5037_v33 }
 0xab4   :  { %3462 = vmatpush3.xpose.msra.mxu1 %v5086_v10  ;;  %v5101_v10 = vld [vmem:[#allocation31_spill] sm:$0xff] }
 0xab5   :  { %3463 = vmatprep.subr.mxu1 %v5037_v33 }
 0xab8   :  { %3464 = vmatpush3.xpose.msra.mxu1 %v5087_v16 }
 0xab9   :  { %3465 = vmatprep.subr.mxu1 %v5037_v33 }
 0xabc   :  { %3466 = vmatpush3.xpose.msra.mxu1 %v5088_v13 }
 0xabd   :  { %3467 = vmatprep.subr.mxu1 %v5037_v33 }
 0xac0   :  { %3468 = vmatpush3.xpose.msra.mxu1 %v5089_v12 }
 0xac1   :  { %3469 = vmatprep.subr.mxu1 %v5037_v33 }
 0xac4   :  { %3470 = vmatpush3.xpose.msra.mxu1 %v5090_v0 }
 0xac5   :  { %3471 = vmatprep.subr.mxu1 %v5037_v33 }
 0xac8   :  { %3472 = vmatpush3.xpose.msra.mxu1 %v5091_v20 }
 0xac9   :  { %3473 = vmatprep.subr.mxu1 %v5037_v33 }
 0xacc   :  { %3474 = vmatpush3.xpose.msra.mxu1 %v5092_v14  ;;  %v5102_v14 = vld [vmem:[#allocation33_spill] sm:$0xff] }
 0xacd   :  { %3475 = vmatprep.subr.mxu1 %v5037_v33 }
 0xad0   :  { %3476 = vmatpush3.xpose.msra.mxu1 %v5093_v15  ;;  %v5103_v15 = vld [vmem:[#allocation34_spill] sm:$0xff] }
 0xad1   :  { %3477 = vmatprep.subr.mxu1 %v5037_v33 }
 0xad4   :  { %3478 = vmatpush3.xpose.msra.mxu1 %v5094_v62  ;;  %v5104_v62 = vld [vmem:[#allocation35_spill] sm:$0xff] }
 0xad5   :  { %3479 = vmatprep.subr.mxu1 %v5037_v33 }
 0xad8   :  { %3480 = vmatpush3.xpose.msra.mxu1 %v5095_v60  ;;  %v5105_v60 = vld [vmem:[#allocation41_spill] sm:$0xff] }
 0xad9   :  { %3481 = vmatprep.subr.mxu1 %v5037_v33 }
 0xadc   :  { %3482 = vmatpush3.xpose.msra.mxu1 %v5096_v11  ;;  %v5106_v11 = vld [vmem:[#allocation40_spill] sm:$0xff] }
 0xadd   :  { %3483 = vmatprep.subr.mxu1 %v5037_v33 }
 0xae0   :  { %3484 = vmatpush3.xpose.msra.mxu1 %v5097_v18  ;;  %v5107_v18 = vld [vmem:[#allocation42_spill] sm:$0xff] }
 0xae1   :  { %3485 = vmatprep.subr.mxu1 %v5037_v33 }
 0xae4   :  { %3486 = vmatpush3.xpose.msra.mxu1 %v5098_v27  ;;  %v5108_v27 = vld [vmem:[#allocation43_spill] sm:$0xff] }
 0xae5   :  { %3487 = vmatprep.subr.mxu1 %v5037_v33 }
 0xae8   :  { %3488 = vmatpush3.xpose.msra.mxu1 %v5099_v1  ;;  %v5109_v1 = vld [vmem:[#allocation44_spill] sm:$0xff] }
 0xae9   :  { %3507 = vmatprep.subr.mxu1 %v5037_v33 }
 0xaeb   :  { %3490 = vmatmul.mubr.f32.vlgmr.msra.gmra.mxu1 %v4463_v19  ;;  %v4686_v19 = vld [vmem:[%s4956_s4] ss:$0 sm:$0xff]  ;;  %s3831_s4 = smov [#allocation8]  }
 0xaec   :  { %3509 = vmatprep.mubr.msk.f32.mxu1 %vm3827_vm7, %v5037_v33  ;;  %s2790_s14 = sshll.u32 %s3831_s4, 4  ;;  %s2791_s14 = int_to_ptr.vmem [resolvable:$true] %s2790_s14 }
 0xaed   :  { %s3793_s15 = scalar_lea.vmem %s2791_s14, 256  ;;  %p3798_p2 = scmp.lt.s32.totalorder %s2791_s14, %s2791_s14 }
 0xaee   :  { %p3794_p1 = scmp.ne.s32.totalorder %s2791_s14, %s3793_s15  ;;  %p3799_p3 = scmp.lt.s32.totalorder %s3793_s15, %s3793_s15 }
 0xaf0   :  { %p3800_p4 = por %p3799_p3, %p3798_p2 }
 0xaf2   :  { %p3801_p5 = pnand %p3800_p4, %p3794_p1 }
 0xb01   :  { %v1843_v2 = vpop.xlane.xlu1 %1842 }
 0xb02   :  { %v1844_v3 = vsub.f32 %v1840_v34, %v1843_v2  ;;  %v5110_v2 = vld [vmem:[#allocation45_spill] sm:$0xff] }
 0xb04   :  { %v1845_v4 = vmul.f32 1.442695, %v1844_v3  ;;  %v5111_v3 = vld [vmem:[#allocation46_spill] sm:$0xff] }
 0xb05   :  { %v1926_v20 = vpop.permute.xlu1 %1925 }
 0xb06   :  { %3701 = vpow2.f32 %v1845_v4  ;;  %v5112_v4 = vld [vmem:[#allocation47_spill] sm:$0xff] }
 0xb13   :  { %v3702_v5 = vpop.eup %3701 }
 0xb14   :  { %v1847_v6 = vsel %vm401_vm9, %v3702_v5, 0.0 }
 0xb15   :  { %1848 = vadd.xlane.f32.xlu0 %v1847_v6  ;;  %v5114_v6 = vld [vmem:[#allocation49_spill] sm:$0xff] }
 0xb2b   :  { %1927 = vrot.lane.b32.xlu0 %v4544_v42, %s3828_s11 }
 0xb6b   :  { %v1514_v30 = vpop.f32.mrf.mxu1 }
 0xb6c   :  { %v1518_v36 = vadd.f32 %v1514_v30, %v4531_v24 }
 0xb6d   :  { %v3456_v37 = vpop.f32.mrf.mxu1 }
 0xb6e   :  { %v1525_v38 = vadd.f32 %v4686_v19, %v1518_v36 }
 0xb70   :  { %v1527_v39 = vcombine.high %v1525_v38, %v1525_v38  ;;  %v1534_v40 = vrot.slane %v1525_v38, %v4689_v35 }
 0xb72   :  { %v1541_v41 = vrot.slane %v1527_v39, %v4689_v35  ;;  %v1542_v43 = vcombine.high %v1534_v40, %v1534_v40  ;;  %v1550_v45 = vrot.slane %v1534_v40, %v4689_v35  ;;  %2884 = vst.sshfl [vmem:[#allocation8] sm:$0x1 pattern:$0x73625140] %v1534_v40 }
 0xb74   :  { %v1543_v46 = vcombine.high %v1541_v41, %v1541_v41  ;;  %v1557_v47 = vrot.slane %v1541_v41, %v4689_v35  ;;  %v1564_v63 = vrot.slane %v1542_v43, %v4689_v35  ;;  %v1572_v34 = vcombine.high %v1550_v45, %v1550_v45  ;;  %2885 = vst.sshfl [vmem:[#allocation8 + $0x2] sm:$0x1 pattern:$0x73625140] %v1542_v43 }
 0xb75   :  { %2886 = vst.sshfl [vmem:[#allocation8 + $0x8] sm:$0x1 pattern:$0x73625140] %v1541_v41 }
 0xb76   :  { %v1571_v24 = vrot.slane %v1543_v46, %v4689_v35  ;;  %v1573_v23 = vcombine.high %v1557_v47, %v1557_v47  ;;  %v1574_v25 = vcombine.high %v1564_v63, %v1564_v63  ;;  %1586 = vst [vmem:[#allocation8 + $0x4] sm:$0x1] %v1572_v34  ;;  %2887 = vst.sshfl [vmem:[#allocation8 + $0xa] sm:$0x1 pattern:$0x73625140] %v1543_v46 }
 0xb78   :  { %v1575_v61 = vcombine.high %v1571_v24, %v1571_v24  ;;  %1587 = vst [vmem:[#allocation8 + $0x6] sm:$0x1] %v1574_v25  ;;  %1590 = vst [vmem:[#allocation8 + $0xc] sm:$0x1] %v1573_v23  ;;  %v3717_v23 = vld [vmem:[#allocation7 + $0x78] sm:$0xff]  ;;  %v3718_v25 = vld [vmem:[#allocation7 + $0x70] sm:$0xff] }
 0xb7a   :  { %1591 = vst [vmem:[#allocation8 + $0xe] sm:$0x1] %v1575_v61  ;;  %v3719_v61 = vld [vmem:[#allocation7 + $0x68] sm:$0xff] }
 0xb9e   :  { %v1849_v22 = vpop.xlane.xlu0 %1848 }
 0xb9f   :  { %3703 = vrcp.f32 %v1849_v22  ;;  %v3720_v22 = vld [vmem:[#allocation7 + $0x60] sm:$0xff] }
 0xba2   :  { %v1928_v0 = vpop.permute.xlu0 %1927 }
 0xbab   :  { %v1760_v26 = vpop.f32.mrf.mxu1 }
 0xbac   :  { %v3704_v9 = vpop.eup %3703  ;;  %v4700_v16 = vadd.f32 %v1760_v26, %v5101_v10  ;;  %v3721_v26 = vld [vmem:[#allocation7 + $0x58] sm:$0xff]  ;;  %v3723_v10 = vld [vmem:[#allocation7 + $0x48] sm:$0xff] }
 0xbad   :  { %v3491_v13 = vpop.f32.mrf.mxu1  ;;  %v1851_v12 = vmul.f32 %v3704_v9, %v3702_v5  ;;  %v5113_v5 = vld [vmem:[#allocation48_spill] sm:$0xff] }
 0xbae   :  { %3498 = vmatpush3.msra.mxu0 %v4700_v16  ;;  %v3722_v9 = vld [vmem:[#allocation7 + $0x50] sm:$0xff]  ;;  %v3724_v13 = vld [vmem:[#allocation7 + $0x40] sm:$0xff] }
 0xbaf   :  { %3500 = vmatmul.mubr.msk.f32.vlgmr.msra.gmra.mxu0 %vm401_vm9, %v1851_v12  ;;  %3502 = vmatprep.subr.mxu0 %v5037_v33  ;;  %v3725_v12 = vld [vmem:[#allocation7 + $0x38] sm:$0xff] }
 0xbb0   :  { %3503 = vmatpush3.xpose.msk.msra.mxu0 %vm323_vm8, %v1928_v0  ;;  %3504 = vmatprep.mubr.msk.f32.mxu0 %vm3827_vm7, %v5037_v33  ;;  %v3726_v0 = vld [vmem:[#allocation7 + $0x30] sm:$0xff] }
 0xbb1   :  { %3512 = vmatprep.subr.mxu0 %v5037_v33 }
 0xbb3   :  { %3505 = vmatmul.mubr.msk.f32.vlgmr.msra.gmra.mxu0 %vm323_vm8, %v1926_v20  ;;  %v3727_v20 = vld [vmem:[#allocation7 + $0x28] sm:$0xff] }
 0xbb4   :  { %3513 = vmatpush3.xpose.msk.msra.mxu0 %vm323_vm8, %v5102_v14  ;;  %3544 = vmatprep.mubr.msk.f32.mxu0 %vm3827_vm7, %v5037_v33  ;;  %v3728_v14 = vld [vmem:[#allocation7 + $0x20] sm:$0xff] }
 0xbb5   :  { %3514 = vmatprep.subr.mxu0 %v5037_v33 }
 0xbb8   :  { %3515 = vmatpush3.xpose.msk.msra.mxu0 %vm323_vm8, %v5103_v15  ;;  %v3729_v15 = vld [vmem:[#allocation7 + $0x18] sm:$0xff] }
 0xbb9   :  { %3516 = vmatprep.subr.mxu0 %v5037_v33 }
 0xbbc   :  { %3517 = vmatpush3.xpose.msk.msra.mxu0 %vm323_vm8, %v5104_v62  ;;  %v3730_v62 = vld [vmem:[#allocation7 + $0x10] sm:$0xff] }
 0xbbd   :  { %3518 = vmatprep.subr.mxu0 %v5037_v33 }
 0xbc0   :  { %3519 = vmatpush3.xpose.msk.msra.mxu0 %vm323_vm8, %v5105_v60  ;;  %v3731_v60 = vld [vmem:[#allocation7 + $0x8] sm:$0xff] }
 0xbc1   :  { %3520 = vmatprep.subr.mxu0 %v5037_v33 }
 0xbc4   :  { %3521 = vmatpush3.xpose.msk.msra.mxu0 %vm323_vm8, %v5106_v11  ;;  %v3732_v11 = vld [vmem:[#allocation7] sm:$0xff] }
 0xbc5   :  { %3522 = vmatprep.subr.mxu0 %v5037_v33 }
 0xbc8   :  { %3523 = vmatpush3.xpose.msk.msra.mxu0 %vm323_vm8, %v5107_v18 }
 0xbc9   :  { %3524 = vmatprep.subr.mxu0 %v5037_v33 }
 0xbcc   :  { %3525 = vmatpush3.xpose.msk.msra.mxu0 %vm323_vm8, %v5108_v27 }
 0xbcd   :  { %3526 = vmatprep.subr.mxu0 %v5037_v33 }
 0xbd0   :  { %3527 = vmatpush3.xpose.msk.msra.mxu0 %vm323_vm8, %v5109_v1 }
 0xbd1   :  { %3528 = vmatprep.subr.mxu0 %v5037_v33 }
 0xbd4   :  { %3529 = vmatpush3.xpose.msk.msra.mxu0 %vm323_vm8, %v5110_v2 }
 0xbd5   :  { %3530 = vmatprep.subr.mxu0 %v5037_v33 }
 0xbd8   :  { %3531 = vmatpush3.xpose.msk.msra.mxu0 %vm323_vm8, %v5111_v3  ;;  %v5118_v3 = vld [vmem:[#allocation54_spill] sm:$0xff] }
 0xbd9   :  { %3532 = vmatprep.subr.mxu0 %v5037_v33 }
 0xbdc   :  { %3533 = vmatpush3.xpose.msk.msra.mxu0 %vm323_vm8, %v5112_v4  ;;  %v5119_v4 = vld [vmem:[#allocation55_spill] sm:$0xff] }
 0xbdd   :  { %3534 = vmatprep.subr.mxu0 %v5037_v33 }
 0xbe0   :  { %3535 = vmatpush3.xpose.msk.msra.mxu0 %vm323_vm8, %v5113_v5  ;;  %v5120_v5 = vld [vmem:[#allocation56_spill] sm:$0xff] }
 0xbe1   :  { %3536 = vmatprep.subr.mxu0 %v5037_v33 }
 0xbe4   :  { %3537 = vmatpush3.xpose.msk.msra.mxu0 %vm323_vm8, %v5114_v6  ;;  %v5121_v6 = vld [vmem:[#allocation57_spill] sm:$0xff] }
 0xbe5   :  { %3538 = vmatprep.subr.mxu0 %v5037_v33 }
 0xbe8   :  { %3539 = vmatpush3.xpose.msk.msra.mxu0 %vm323_vm8, %v5115_v7  ;;  %v5122_v7 = vld [vmem:[#allocation58_spill] sm:$0xff] }
 0xbe9   :  { %3540 = vmatprep.subr.mxu0 %v5037_v33 }
 0xbec   :  { %3541 = vmatpush3.xpose.msk.msra.mxu0 %vm323_vm8, %v5116_v8  ;;  %v5123_v8 = vld [vmem:[#allocation59_spill] sm:$0xff] }
 0xbed   :  { %3542 = vmatprep.subr.mxu0 %v5037_v33 }
 0xbf0   :  { %3543 = vmatpush3.xpose.msk.msra.mxu0 %vm323_vm8, %v5117_v21  ;;  %v5124_v21 = vld [vmem:[#allocation60_spill] sm:$0xff] }
 0xbf1   :  { %3582 = vmatprep.subr.mxu0 %v5037_v33 }
 0xc6f   :  { %v4760_v30 = vpop.f32.mrf.mxu0 }
 0xc71   :  { %v3501_v32 = vpop.f32.mrf.mxu0 }
 0xc72   :  { %v5126_v32 = vld [vmem:[#allocation62_spill] sm:$0xff] }
 0xc73   :  { %v1999_v36 = vpop.f32.mrf.mxu0 }
 0xc74   :  { %v2003_v37 = vmul.f32 0.17677669, %v1999_v36  ;;  %v5127_v36 = vld [vmem:[#allocation63_spill] sm:$0xff] }
 0xc75   :  { %v3506_v38 = vpop.f32.mrf.mxu0 }
 0xc76   :  { %v2004_v39 = vsel %vm401_vm9, %v2003_v37, -inf  ;;  %v5129_v38 = vld [vmem:[#allocation65_spill] sm:$0xff] }
 0xc77   :  { %2005 = vmax.xlane.f32.xlu1 %v2004_v39  ;;  %v5130_v39 = vld [vmem:[#allocation66_spill] sm:$0xff] }
 0xc88   :  { %2240 = vrot.lane.b32.xlu1 %v4544_v42, %s3829_s2 }
 0xc8c   :  { %2238 = vrot.lane.b32.xlu1 %v4549_v44, %s3829_s2 }
 0xd00   :  { %v2006_v40 = vpop.xlane.xlu1 %2005 }
 0xd01   :  { %v2007_v41 = vsub.f32 %v2003_v37, %v2006_v40  ;;  %v5128_v37 = vld [vmem:[#allocation64_spill] sm:$0xff]  ;;  %v5131_v40 = vld [vmem:[#allocation67_spill] sm:$0xff] }
 0xd03   :  { %v2008_v43 = vmul.f32 1.442695, %v2007_v41  ;;  %v5132_v41 = vld [vmem:[#allocation68_spill] sm:$0xff] }
 0xd04   :  { %v2241_v18 = vpop.permute.xlu1 %2240 }
 0xd05   :  { %3705 = vpow2.f32 %v2008_v43 }
 0xd08   :  { %v2239_v2 = vpop.permute.xlu1 %2238 }
 0xd12   :  { %v3706_v45 = vpop.eup %3705 }
 0xd13   :  { %v2010_v46 = vsel %vm401_vm9, %v3706_v45, 0.0 }
 0xd14   :  { %2011 = vadd.xlane.f32.xlu0 %v2010_v46  ;;  %v5133_v46 = vld [vmem:[#allocation69_spill] sm:$0xff] }
 0xd2a   :  { %2016 = vrot.lane.b32.xlu0 %v4700_v16, %s3828_s11 }
 0xd9d   :  { %v2012_v47 = vpop.xlane.xlu0 %2011 }
 0xd9e   :  { %3707 = vrcp.f32 %v2012_v47 }
 0xda1   :  { %v2017_v63 = vpop.permute.xlu0 %2016 }
 0xda2   :  { %3508 = vmatpush3.msra.mxu1 %v2017_v63 }
 0xda3   :  { %3547 = vmatprep.subr.mxu1 %v5037_v33 }
 0xdab   :  { %v3708_v34 = vpop.eup %3707 }
 0xdac   :  { %v2014_v24 = vmul.f32 %v3708_v34, %v3706_v45 }
 0xdae   :  { %3510 = vmatmul.mubr.msk.f32.vlgmr.msra.gmra.mxu1 %vm401_vm9, %v2014_v24 }
 0xdaf   :  { %3548 = vmatpush3.xpose.msk.msra.mxu1 %vm323_vm8, %v3717_v23  ;;  %3579 = vmatprep.mubr.msk.f32.mxu1 %vm3827_vm7, %v5037_v33 }
 0xdb0   :  { %3549 = vmatprep.subr.mxu1 %v5037_v33 }
 0xdb3   :  { %3550 = vmatpush3.xpose.msk.msra.mxu1 %vm323_vm8, %v3718_v25 }
 0xdb4   :  { %3551 = vmatprep.subr.mxu1 %v5037_v33 }
 0xdb7   :  { %3552 = vmatpush3.xpose.msk.msra.mxu1 %vm323_vm8, %v3719_v61 }
 0xdb8   :  { %3553 = vmatprep.subr.mxu1 %v5037_v33 }
 0xdbb   :  { %3554 = vmatpush3.xpose.msk.msra.mxu1 %vm323_vm8, %v3720_v22 }
 0xdbc   :  { %3555 = vmatprep.subr.mxu1 %v5037_v33 }
 0xdbf   :  { %3556 = vmatpush3.xpose.msk.msra.mxu1 %vm323_vm8, %v3721_v26 }
 0xdc0   :  { %3557 = vmatprep.subr.mxu1 %v5037_v33 }
 0xdc3   :  { %3558 = vmatpush3.xpose.msk.msra.mxu1 %vm323_vm8, %v3722_v9 }
 0xdc4   :  { %3559 = vmatprep.subr.mxu1 %v5037_v33 }
 0xdc7   :  { %3560 = vmatpush3.xpose.msk.msra.mxu1 %vm323_vm8, %v3723_v10 }
 0xdc8   :  { %3561 = vmatprep.subr.mxu1 %v5037_v33 }
 0xdcb   :  { %3562 = vmatpush3.xpose.msk.msra.mxu1 %vm323_vm8, %v3724_v13 }
 0xdcc   :  { %3563 = vmatprep.subr.mxu1 %v5037_v33 }
 0xdcf   :  { %3564 = vmatpush3.xpose.msk.msra.mxu1 %vm323_vm8, %v3725_v12 }
 0xdd0   :  { %3565 = vmatprep.subr.mxu1 %v5037_v33 }
 0xdd3   :  { %3566 = vmatpush3.xpose.msk.msra.mxu1 %vm323_vm8, %v3726_v0 }
 0xdd4   :  { %3567 = vmatprep.subr.mxu1 %v5037_v33 }
 0xdd7   :  { %3568 = vmatpush3.xpose.msk.msra.mxu1 %vm323_vm8, %v3727_v20 }
 0xdd8   :  { %3569 = vmatprep.subr.mxu1 %v5037_v33 }
 0xddb   :  { %3570 = vmatpush3.xpose.msk.msra.mxu1 %vm323_vm8, %v3728_v14 }
 0xddc   :  { %3571 = vmatprep.subr.mxu1 %v5037_v33 }
 0xddf   :  { %3572 = vmatpush3.xpose.msk.msra.mxu1 %vm323_vm8, %v3729_v15 }
 0xde0   :  { %3573 = vmatprep.subr.mxu1 %v5037_v33 }
 0xde3   :  { %3574 = vmatpush3.xpose.msk.msra.mxu1 %vm323_vm8, %v3730_v62 }
 0xde4   :  { %3575 = vmatprep.subr.mxu1 %v5037_v33 }
 0xde7   :  { %3576 = vmatpush3.xpose.msk.msra.mxu1 %vm323_vm8, %v3731_v60 }
 0xde8   :  { %3577 = vmatprep.subr.mxu1 %v5037_v33 }
 0xdeb   :  { %3578 = vmatpush3.xpose.msk.msra.mxu1 %vm323_vm8, %v3732_v11 }
 0xdec   :  { %3587 = vmatprep.subr.mxu1 %v5037_v33 }
 0xdee   :  { %3580 = vmatmul.mubr.msk.f32.vlgmr.msra.gmra.mxu1 %vm323_vm8, %v4760_v30  ;;  %v5125_v30 = vld [vmem:[#allocation61_spill] sm:$0xff] }
 0xdef   :  { %3589 = vmatprep.mubr.msk.f32.mxu1 %vm3827_vm7, %v5037_v33 }
 0xe6e   :  { %v2088_v27 = vpop.f32.mrf.mxu1 }
 0xe6f   :  { %3545 = vmatmul.mubr.msk.f32.vlgmr.msra.gmra.mxu0 %vm323_vm8, %v2088_v27 }
 0xe70   :  { %3583 = vmatpush3.xpose.msk.msra.mxu0 %vm323_vm8, %v2241_v18  ;;  %v3511_v1 = vpop.f32.mrf.mxu1  ;;  %3584 = vmatprep.mubr.msk.f32.mxu0 %vm3827_vm7, %v5037_v33 }
 0xe71   :  { %3592 = vmatprep.subr.mxu0 %v5037_v33 }
 0xe73   :  { %3585 = vmatmul.mubr.msk.f32.vlgmr.msra.gmra.mxu0 %vm323_vm8, %v2239_v2 }
 0xe74   :  { %3593 = vmatpush3.xpose.msk.msra.mxu0 %vm323_vm8, %v5118_v3  ;;  %3624 = vmatprep.mubr.msk.f32.mxu0 %vm3827_vm7, %v5037_v33 }
 0xe75   :  { %3594 = vmatprep.subr.mxu0 %v5037_v33 }
 0xe78   :  { %3595 = vmatpush3.xpose.msk.msra.mxu0 %vm323_vm8, %v5119_v4 }
 0xe79   :  { %3596 = vmatprep.subr.mxu0 %v5037_v33 }
 0xe7c   :  { %3597 = vmatpush3.xpose.msk.msra.mxu0 %vm323_vm8, %v5120_v5 }
 0xe7d   :  { %3598 = vmatprep.subr.mxu0 %v5037_v33 }
 0xe80   :  { %3599 = vmatpush3.xpose.msk.msra.mxu0 %vm323_vm8, %v5121_v6 }
 0xe81   :  { %3600 = vmatprep.subr.mxu0 %v5037_v33 }
 0xe84   :  { %3601 = vmatpush3.xpose.msk.msra.mxu0 %vm323_vm8, %v5122_v7 }
 0xe85   :  { %3602 = vmatprep.subr.mxu0 %v5037_v33 }
 0xe88   :  { %3603 = vmatpush3.xpose.msk.msra.mxu0 %vm323_vm8, %v5123_v8 }
 0xe89   :  { %3604 = vmatprep.subr.mxu0 %v5037_v33 }
 0xe8c   :  { %3605 = vmatpush3.xpose.msk.msra.mxu0 %vm323_vm8, %v5124_v21 }
 0xe8d   :  { %3606 = vmatprep.subr.mxu0 %v5037_v33 }
 0xe90   :  { %3607 = vmatpush3.xpose.msk.msra.mxu0 %vm323_vm8, %v5125_v30 }
 0xe91   :  { %3608 = vmatprep.subr.mxu0 %v5037_v33 }
 0xe94   :  { %3609 = vmatpush3.xpose.msk.msra.mxu0 %vm323_vm8, %v5126_v32 }
 0xe95   :  { %3610 = vmatprep.subr.mxu0 %v5037_v33 }
 0xe98   :  { %3611 = vmatpush3.xpose.msk.msra.mxu0 %vm323_vm8, %v5127_v36 }
 0xe99   :  { %3612 = vmatprep.subr.mxu0 %v5037_v33 }
 0xe9c   :  { %3613 = vmatpush3.xpose.msk.msra.mxu0 %vm323_vm8, %v5128_v37 }
 0xe9d   :  { %3614 = vmatprep.subr.mxu0 %v5037_v33 }
 0xea0   :  { %3615 = vmatpush3.xpose.msk.msra.mxu0 %vm323_vm8, %v5129_v38 }
 0xea1   :  { %3616 = vmatprep.subr.mxu0 %v5037_v33 }
 0xea4   :  { %3617 = vmatpush3.xpose.msk.msra.mxu0 %vm323_vm8, %v5130_v39 }
 0xea5   :  { %3618 = vmatprep.subr.mxu0 %v5037_v33 }
 0xea8   :  { %3619 = vmatpush3.xpose.msk.msra.mxu0 %vm323_vm8, %v5131_v40 }
 0xea9   :  { %3620 = vmatprep.subr.mxu0 %v5037_v33 }
 0xeac   :  { %3621 = vmatpush3.xpose.msk.msra.mxu0 %vm323_vm8, %v5132_v41 }
 0xead   :  { %3622 = vmatprep.subr.mxu0 %v5037_v33 }
 0xeae   :  { %v2234_v43 = vpop.f32.mrf.mxu1 }
 0xeb0   :  { %v3581_v45 = vpop.f32.mrf.mxu1  ;;  %3623 = vmatpush3.xpose.msk.msra.mxu0 %vm323_vm8, %v5133_v46 }
 0xf2f   :  { %v2161_v47 = vpop.f32.mrf.mxu0 }
 0xf30   :  { %v2235_v5 = vadd.f32 %v2234_v43, %v2161_v47 }
 0xf31   :  { %v3546_v63 = vpop.f32.mrf.mxu0 }
 0xf33   :  { %v2312_v34 = vpop.f32.mrf.mxu0 }
 0xf34   :  { %v2316_v24 = vmul.f32 0.17677669, %v2312_v34 }
 0xf35   :  { %v3586_v23 = vpop.f32.mrf.mxu0 }
 0xf36   :  { %v2317_v25 = vsel %vm401_vm9, %v2316_v24, -inf }
 0xf37   :  { %2318 = vmax.xlane.f32.xlu0 %v2317_v25 }
 0xf4d   :  { %2328 = vrot.lane.b32.xlu0 %v4700_v16, %s3829_s2 }
 0xf51   :  { %2478 = vrot.lane.b32.xlu0 %v4549_v44, %s3823_s28 }
 0xfc0   :  { %v2319_v61 = vpop.xlane.xlu0 %2318 }
 0xfc1   :  { %v2320_v22 = vsub.f32 %v2316_v24, %v2319_v61 }
 0xfc3   :  { %v2321_v26 = vmul.f32 1.442695, %v2320_v22 }
 0xfc4   :  { %v2329_v9 = vpop.permute.xlu0 %2328 }
 0xfc5   :  { %3709 = vpow2.f32 %v2321_v26  ;;  %3588 = vmatpush3.msra.mxu1 %v2329_v9 }
 0xfc6   :  { %3627 = vmatprep.subr.mxu1 %v5037_v33 }
 0xfc8   :  { %v2479_v14 = vpop.permute.xlu0 %2478 }
 0xfd2   :  { %v3710_v10 = vpop.eup %3709 }
 0xfd3   :  { %v2323_v13 = vsel %vm401_vm9, %v3710_v10, 0.0 }
 0xfd4   :  { %2324 = vadd.xlane.f32.xlu1 %v2323_v13 }
 0xfe5   :  { %2480 = vrot.lane.b32.xlu1 %v4544_v42, %s3823_s28 }
0x105d   :  { %v2325_v12 = vpop.xlane.xlu1 %2324 }
0x105e   :  { %3711 = vrcp.f32 %v2325_v12 }
0x1061   :  { %v2481_v44 = vpop.permute.xlu1 %2480 }
0x106b   :  { %v3712_v0 = vpop.eup %3711 }
0x106c   :  { %v2327_v20 = vmul.f32 %v3712_v0, %v3710_v10 }
0x106e   :  { %3590 = vmatmul.mubr.msk.f32.vlgmr.msra.gmra.mxu1 %vm401_vm9, %v2327_v20 }
0x106f   :  { %3628 = vmatpush3.xpose.msk.msra.mxu1 %vm323_vm8, %v2481_v44  ;;  %3629 = vmatprep.mubr.msk.f32.mxu1 %vm3827_vm7, %v5037_v33 }
0x1070   :  { %3632 = vmatprep.subr.mxu1 %v5037_v33 }
0x1072   :  { %3630 = vmatmul.mubr.msk.f32.vlgmr.msra.gmra.mxu1 %vm323_vm8, %v2479_v14 }
0x1073   :  { %3634 = vmatprep.mubr.msk.f32.mxu1 %vm3827_vm7, %v5037_v33 }
0x112e   :  { %v2400_v42 = vpop.f32.mrf.mxu1 }
0x112f   :  { %3625 = vmatmul.mubr.msk.f32.vlgmr.msra.gmra.mxu0 %vm323_vm8, %v2400_v42 }
0x1130   :  { %v3591_v15 = vpop.f32.mrf.mxu1 }
0x1132   :  { %v2552_v62 = vpop.f32.mrf.mxu1 }
0x1133   :  { %v2556_v60 = vmul.f32 0.17677669, %v2552_v62 }
0x1134   :  { %v3631_v11 = vpop.f32.mrf.mxu1 }
0x1135   :  { %v2557_v18 = vsel %vm401_vm9, %v2556_v60, -inf }
0x1136   :  { %2558 = vmax.xlane.f32.xlu1 %v2557_v18 }
0x11bf   :  { %v2559_v27 = vpop.xlane.xlu1 %2558 }
0x11c0   :  { %v2560_v1 = vsub.f32 %v2556_v60, %v2559_v27 }
0x11c2   :  { %v2561_v2 = vmul.f32 1.442695, %v2560_v1 }
0x11c4   :  { %3713 = vpow2.f32 %v2561_v2 }
0x11d1   :  { %v3714_v3 = vpop.eup %3713 }
0x11d2   :  { %v2563_v4 = vsel %vm401_vm9, %v3714_v3, 0.0 }
0x11d3   :  { %2564 = vadd.xlane.f32.xlu0 %v2563_v4 }
0x11e9   :  { %2568 = vrot.lane.b32.xlu0 %v4700_v16, %s3823_s28 }
0x11ef   :  { %v2473_v6 = vpop.f32.mrf.mxu0 }
0x11f0   :  { %v2477_v7 = vadd.f32 %v2473_v6, %v2235_v5 }
0x11f1   :  { %v3626_v8 = vpop.f32.mrf.mxu0 }
0x125c   :  { %v2565_v21 = vpop.xlane.xlu0 %2564 }
0x125d   :  { %3715 = vrcp.f32 %v2565_v21 }
0x1260   :  { %v2569_v30 = vpop.permute.xlu0 %2568 }
0x1261   :  { %3633 = vmatpush3.msra.mxu1 %v2569_v30 }
0x1262   :  { %3637 = vmatprep.subr.mxu1 %v5037_v33 }
0x126a   :  { %v3716_v32 = vpop.eup %3715 }
0x126b   :  { %v2567_v36 = vmul.f32 %v3716_v32, %v3714_v3 }
0x126d   :  { %3635 = vmatmul.mubr.msk.f32.vlgmr.msra.gmra.mxu1 %vm401_vm9, %v2567_v36 }
0x126e   :  { %3638 = vmatpush3.xpose.msk.msra.mxu1 %vm323_vm8, %v4556_v48  ;;  %3669 = vmatprep.mubr.msk.f32.mxu1 %vm3827_vm7, %v5037_v33 }
0x126f   :  { %3639 = vmatprep.subr.mxu1 %v5037_v33 }
0x1272   :  { %3640 = vmatpush3.xpose.msk.msra.mxu1 %vm323_vm8, %v4563_v49 }
0x1273   :  { %3641 = vmatprep.subr.mxu1 %v5037_v33 }
0x1276   :  { %3642 = vmatpush3.xpose.msk.msra.mxu1 %vm323_vm8, %v4569_v50 }
0x1277   :  { %3643 = vmatprep.subr.mxu1 %v5037_v33 }
0x127a   :  { %3644 = vmatpush3.xpose.msk.msra.mxu1 %vm323_vm8, %v4574_v51 }
0x127b   :  { %3645 = vmatprep.subr.mxu1 %v5037_v33 }
0x127e   :  { %3646 = vmatpush3.xpose.msk.msra.mxu1 %vm323_vm8, %v4579_v52 }
0x127f   :  { %3647 = vmatprep.subr.mxu1 %v5037_v33 }
0x1282   :  { %3648 = vmatpush3.xpose.msk.msra.mxu1 %vm323_vm8, %v4583_v53 }
0x1283   :  { %3649 = vmatprep.subr.mxu1 %v5037_v33 }
0x1286   :  { %3650 = vmatpush3.xpose.msk.msra.mxu1 %vm323_vm8, %v4589_v54 }
0x1287   :  { %3651 = vmatprep.subr.mxu1 %v5037_v33 }
0x128a   :  { %3652 = vmatpush3.xpose.msk.msra.mxu1 %vm323_vm8, %v4593_v56 }
0x128b   :  { %3653 = vmatprep.subr.mxu1 %v5037_v33 }
0x128e   :  { %3654 = vmatpush3.xpose.msk.msra.mxu1 %vm323_vm8, %v4599_v17 }
0x128f   :  { %3655 = vmatprep.subr.mxu1 %v5037_v33 }
0x1292   :  { %3656 = vmatpush3.xpose.msk.msra.mxu1 %vm323_vm8, %v4603_v29 }
0x1293   :  { %3657 = vmatprep.subr.mxu1 %v5037_v33 }
0x1296   :  { %3658 = vmatpush3.xpose.msk.msra.mxu1 %vm323_vm8, %v4609_v31 }
0x1297   :  { %3659 = vmatprep.subr.mxu1 %v5037_v33 }
0x129a   :  { %3660 = vmatpush3.xpose.msk.msra.mxu1 %vm323_vm8, %v4613_v55 }
0x129b   :  { %3661 = vmatprep.subr.mxu1 %v5037_v33 }
0x129e   :  { %3662 = vmatpush3.xpose.msk.msra.mxu1 %vm323_vm8, %v4619_v57 }
0x129f   :  { %3663 = vmatprep.subr.mxu1 %v5037_v33 }
0x12a2   :  { %3664 = vmatpush3.xpose.msk.msra.mxu1 %vm323_vm8, %v4623_v59 }
0x12a3   :  { %3665 = vmatprep.subr.mxu1 %v5037_v33 }
0x12a6   :  { %3666 = vmatpush3.xpose.msk.msra.mxu1 %vm323_vm8, %v4629_v58 }
0x12a7   :  { %3667 = vmatprep.subr.mxu1 %v5037_v33 }
0x12aa   :  { %3668 = vmatpush3.xpose.msk.msra.mxu1 %vm323_vm8, %v4633_v28 }
0x132d   :  { %v2640_v48 = vpop.f32.mrf.mxu1 }
0x132e   :  { %3670 = vmatmul.mubr.msk.f32.vlgmr.msra.gmra.mxu1 %vm323_vm8, %v2640_v48 }
0x132f   :  { %v3636_v49 = vpop.f32.mrf.mxu1 }
0x13ee   :  { %v2713_v50 = vpop.f32.mrf.mxu1 }
0x13ef   :  { %v2717_v51 = vadd.f32 %v2713_v50, %v2477_v7 }
0x13f0   :  { %v3671_v52 = vpop.f32.mrf.mxu1 }
0x13f1   :  { %v2718_v53 = vadd.f32 %v4686_v19, %v2717_v51 }
0x13f3   :  { %v2720_v54 = vcombine.high %v2718_v53, %v2718_v53  ;;  %v2727_v56 = vrot.slane %v2718_v53, %v4689_v35 }
0x13f5   :  { %v2734_v17 = vrot.slane %v2720_v54, %v4689_v35  ;;  %v2735_v29 = vcombine.high %v2727_v56, %v2727_v56  ;;  %v2743_v33 = vrot.slane %v2727_v56, %v4689_v35  ;;  %2968 = vst.sshfl [vmem:[#allocation8 + $0x1] sm:$0x1 pattern:$0x73625140] %v2727_v56 }
0x13f7   :  { %v2736_v31 = vcombine.high %v2734_v17, %v2734_v17  ;;  %v2750_v55 = vrot.slane %v2734_v17, %v4689_v35  ;;  %v2757_v57 = vrot.slane %v2735_v29, %v4689_v35  ;;  %v2765_v59 = vcombine.high %v2743_v33, %v2743_v33  ;;  %2969 = vst.sshfl [vmem:[#allocation8 + $0x3] sm:$0x1 pattern:$0x73625140] %v2735_v29 }
0x13f8   :  { %2970 = vst.sshfl [vmem:[#allocation8 + $0x9] sm:$0x1 pattern:$0x73625140] %v2734_v17 }
0x13f9   :  { %v2764_v58 = vrot.slane %v2736_v31, %v4689_v35  ;;  %v2766_v28 = vcombine.high %v2750_v55, %v2750_v55  ;;  %v2767_v19 = vcombine.high %v2757_v57, %v2757_v57  ;;  %2779 = vst [vmem:[#allocation8 + $0x5] sm:$0x1] %v2765_v59  ;;  %2971 = vst.sshfl [vmem:[#allocation8 + $0xb] sm:$0x1 pattern:$0x73625140] %v2736_v31 }
0x13fb   :  { %v2768_v16 = vcombine.high %v2764_v58, %v2764_v58  ;;  %2780 = vst [vmem:[#allocation8 + $0x7] sm:$0x1] %v2767_v19  ;;  %2783 = vst [vmem:[#allocation8 + $0xd] sm:$0x1] %v2766_v28 }
0x13fd   :  { %2784 = vst [vmem:[#allocation8 + $0xf] sm:$0x1] %v2768_v16 }
0x13fe   :  { %3804 = shalt.err (!%p3801_p5)
}
0x13ff   :  { %2796 = dma.vmem_to_hbm [thread:$0]  %s2791_s14, 256, %s4957_s5, [#allocation4], %s3823_s28, %s3823_s28, %s3824_s29  }
0x1400   :  { %3817 = dma.done.wait [#allocation4], 256  }
0x1401   :  { %3818 = vsyncadd [#allocation4], 4294967040 }
0x1402   :  { %2800 = vsyncpa [#allocation3], 1 }
0x1403   :  { %2801 = vsyncpa [#allocation6], 1 }
0x1404   :  { %2802 = vsyncpa [#allocation4], 1 }

</bundles_post_ra>
